<compile_context>
chip_gen: v5e
topology: v5e:2x2
jax: 0.10.0
libtpu: 0.0.40
codegen_flags: <defaults>
</compile_context>

<pallas_src>
import numpy as np
import jax
import jax.numpy as jnp
from jax.experimental import pallas as pl
from jax.experimental.pallas import tpu as pltpu


# ----------------------------- fused Pallas kernel ---------------------------


def _lenet_kernel(x_ref, r1_ref, b1_ref, pl_ref, pr_ref, r2_ref, b2_ref,
                  wf1_ref, bf1_ref, wf2_ref, bf2_ref, wf3_ref, bf3_ref,
                  o_ref, p1_scr, s2_scr, fc_scr):
    """One grid step = one block of B images, everything VMEM resident."""
    b = fc_scr.shape[0]           # images per block
    m2 = s2_scr.shape[0]          # 10 * b (conv2 output rows)

    def sigmoid(v):
        # logistic(v) == 0.5*tanh(0.5*v)+0.5 : tanh runs on the EUP,
        # no f32 divide on the VPU.
        return 0.5 * jnp.tanh(0.5 * v) + 0.5

    def mm(a, w):
        return jnp.dot(a, w, preferred_element_type=jnp.float32)

    # ---- conv1 (1->6, 5x5, pad=2): single GEMM (im2row done host-side) -----
    s1 = sigmoid(mm(x_ref[0], r1_ref[...]) + b1_ref[...])        # (B*28, 168)

    # ---- avgpool 2x2/2 as two GEMMs; the row-pool matrix also permutes the
    #      rows to (spatial-row-major, image-minor) so later slices are
    #      contiguous.  Result rows: rr*B + n ; cols: co*14 + cc. -------------
    p1_scr[...] = mm(mm(pl_ref[...], s1), pr_ref[...])           # (B*14, 84)

    # ---- conv2 (6->16, 5x5 valid): 5 shifted GEMMs accumulated in VMEM -----
    s2_scr[...] = mm(p1_scr[pl.ds(0, m2), :], r2_ref[0])
    for i in range(1, 5):
        s2_scr[...] += mm(p1_scr[pl.ds(i * b, m2), :], r2_ref[i])
    s2_scr[...] = sigmoid(s2_scr[...] + b2_ref[...])             # (10*B, 160)

    # ---- fc1 (avgpool2 + NCHW flatten folded into wf1), batched over B -----
    fc_scr[...] = mm(s2_scr[pl.ds(0, b), :], wf1_ref[0])
    for r in range(1, 10):
        fc_scr[...] += mm(s2_scr[pl.ds(r * b, b), :], wf1_ref[r])
    h = sigmoid(fc_scr[...] + bf1_ref[...])                      # (B, 120)

    # ---- fc2, fc3 (output zero-padded to 128 lanes: unmasked stores) -------
    h = sigmoid(mm(h, wf2_ref[...]) + bf2_ref[...])              # (B, 84)
    o_ref[0] = mm(h, wf3_ref[...]) + bf3_ref[...]                # (B, 128)


# --------------------------- host-side weight repack -------------------------


def _repack_weights(params):
    """One-time repack of PyTorch-shaped parameters into GEMM-ready form."""
    w1 = np.asarray(params["conv1_w"], np.float32)    # (6,1,5,5)
    b1 = np.asarray(params["conv1_b"], np.float32)    # (6,)
    w2 = np.asarray(params["conv2_w"], np.float32)    # (16,6,5,5)
    b2 = np.asarray(params["conv2_b"], np.float32)    # (16,)
    f1w = np.asarray(params["fc1_w"], np.float32)     # (400,120)
    f1b = np.asarray(params["fc1_b"], np.float32)     # (120,)
    f2w = np.asarray(params["fc2_w"], np.float32)     # (120,84)
    f2b = np.asarray(params["fc2_b"], np.float32)     # (84,)
    f3w = np.asarray(params["fc3_w"], np.float32)     # (84,10)
    f3b = np.asarray(params["fc3_b"], np.float32)     # (10,)

    # conv1 banded weight, flattened over the 5 row shifts:
    # r1[i*32 + (c+j), co*28 + c] = w1[co,0,i,j]
    cs1 = np.arange(28)
    r1 = np.zeros((5, 32, 6 * 28), np.float32)
    for i in range(5):
        for j in range(5):
            for co in range(6):
                r1[i, cs1 + j, co * 28 + cs1] = w1[co, 0, i, j]
    r1 = np.ascontiguousarray(r1.reshape(160, 168))
    b1w = np.repeat(b1, 28)[None, :].astype(np.float32)              # (1,168)

    # column-pool (per-channel 2->1 averaging) matrix.
    pw = np.arange(14)
    pool_cols = np.zeros((6 * 28, 6 * 14), np.float32)
    for co in range(6):
        pool_cols[co * 28 + 2 * pw, co * 14 + pw] = 0.5
        pool_cols[co * 28 + 2 * pw + 1, co * 14 + pw] = 0.5

    # conv2 banded weights, one matrix per row shift i, channels concatenated
    # along K:  r2[i, ci*14 + (c+j), co*10 + c] = w2[co,ci,i,j]
    cs2 = np.arange(10)
    r2 = np.zeros((5, 84, 160), np.float32)
    for i in range(5):
        for ci in range(6):
            for j in range(5):
                for co in range(16):
                    r2[i, ci * 14 + cs2 + j, co * 10 + cs2] = w2[co, ci, i, j]
    b2w = np.repeat(b2, 10)[None, :].astype(np.float32)              # (1,160)

    # fc1 with avgpool(2,2) + PyTorch NCHW flatten folded in:
    # wf1[r, co*10 + c, f] = 0.25 * fc1_w[co*25 + (r//2)*5 + (c//2), f]
    f1r = f1w.reshape(16, 5, 5, 120)
    up = np.repeat(np.arange(5), 2)
    f1up = f1r[:, up][:, :, up]                                      # (16,10,10,120)
    wf1 = np.ascontiguousarray(
        (0.25 * np.transpose(f1up, (1, 0, 2, 3))).reshape(10, 160, 120),
        np.float32)

    # fc3 zero-padded to 128 output lanes for an unmasked final store.
    wf3 = np.zeros((84, 128), np.float32)
    wf3[:, :10] = f3w
    bf3 = np.zeros((1, 128), np.float32)
    bf3[0, :10] = f3b

    return (r1, b1w, pool_cols, r2, b2w, wf1,
            f1b[None, :].astype(np.float32),
            f2w, f2b[None, :].astype(np.float32),
            wf3, bf3)


def _pool_rows_matrix(b):
    """Row pair-averaging for a block of b images; also permutes output rows
    from (image-major) to (spatial-row-major, image-minor)."""
    m = np.zeros((b * 14, b * 28), np.float32)
    for n in range(b):
        for rr in range(14):
            m[rr * b + n, n * 28 + 2 * rr] = 0.5
            m[rr * b + n, n * 28 + 2 * rr + 1] = 0.5
    return m


# ------------------------------ jitted wrapper -------------------------------


@jax.jit
def _lenet_forward_impl(x, pool_rows, r1, b1, pool_cols, r2, b2,
                        wf1, bf1, wf2, bf2, wf3, bf3):
    n = x.shape[0]
    b = pool_rows.shape[0] // 14          # images per grid step
    g = -(-n // b)                        # number of grid steps
    n_pad = g * b

    # Pad batch + spatial, then im2row over the 5 conv1 row shifts so conv1 is
    # a single (B*28, 160) @ (160, 168) GEMM per block.
    xf = x[:, 0, :, :].astype(jnp.float32)
    xf = jnp.pad(xf, ((0, n_pad - n), (2, 2), (2, 2)))            # (n_pad,32,32)
    shifted = jnp.stack([xf[:, i:i + 28, :] for i in range(5)], axis=2)
    x_packed = shifted.reshape(g, b * 28, 160)

    operands = (x_packed, r1, b1, pool_rows, pool_cols, r2, b2,
                wf1, bf1, wf2, bf2, wf3, bf3)

    def const_spec(arr):
        nd = arr.ndim
        return pl.BlockSpec(arr.shape, lambda i, _nd=nd: (0,) * _nd)

    in_specs = [pl.BlockSpec((1, b * 28, 160), lambda i: (i, 0, 0))]
    in_specs += [const_spec(w) for w in operands[1:]]
    out_specs = pl.BlockSpec((1, b, 128), lambda i: (i, 0, 0))

    per_block_flops = (2 * b * 28 * 160 * 168          # conv1
                       + 2 * (b * 14) * (b * 28) * 168  # row pool
                       + 2 * (b * 14) * 168 * 84        # col pool
                       + 2 * 5 * (10 * b) * 84 * 160    # conv2
                       + 2 * 10 * b * 160 * 120         # fc1
                       + 2 * b * 120 * 84               # fc2
                       + 2 * b * 84 * 128)              # fc3
    transcendentals = g * b * (28 * 168 + 10 * 160 + 120 + 84)
    bytes_accessed = 4 * (int(np.prod(x_packed.shape))
                          + sum(int(np.prod(o.shape)) for o in operands[1:])
                          + g * b * 128)

    out = pl.pallas_call(
        _lenet_kernel,
        out_shape=jax.ShapeDtypeStruct((g, b, 128), jnp.float32),
        grid=(g,),
        in_specs=in_specs,
        out_specs=out_specs,
        scratch_shapes=[pltpu.VMEM((b * 14, 84), jnp.float32),
                        pltpu.VMEM((10 * b, 160), jnp.float32),
                        pltpu.VMEM((b, 120), jnp.float32)],
        compiler_params=pltpu.CompilerParams(
            dimension_semantics=("parallel",)),
        cost_estimate=pl.CostEstimate(
            flops=g * per_block_flops,
            transcendentals=transcendentals,
            bytes_accessed=bytes_accessed),
    )(*operands)

    return out.reshape(n_pad, 128)[:n, :10]


def make_lenet_forward(params):
    """Repack + upload the weights ONCE; return a forward(x) -> (N,10) fn."""
    dev_weights = tuple(jnp.asarray(w) for w in _repack_weights(params))
    pool_cache = {}

    def forward(x):
        assert x.shape[1:] == (1, 28, 28), "kernel specialized to 28x28 LeNet"
        n = x.shape[0]
        b = 8 if n >= 16 else max(1, n // 2)   # >=2 grid steps whenever N>=2
        if b not in pool_cache:
            pool_cache[b] = jnp.asarray(_pool_rows_matrix(b))
        return _lenet_forward_impl(x, pool_cache[b], *dev_weights)

    return forward


# ------------------------------- parameters / reference ----------------------


def init_lenet_params(key, input_hw=(28, 28)):
    """Deterministic synthetic parameters with the nn.Module's shapes."""
    H, W = input_hw
    h1, w1 = H // 2, W // 2
    h2, w2 = (h1 - 4) // 2, (w1 - 4) // 2
    flat = 16 * h2 * w2
    ks = jax.random.split(key, 10)

    def u(k, shape, scale):
        return jax.random.uniform(k, shape, jnp.float32, -1.0, 1.0) * scale

    return {
        "conv1_w": u(ks[0], (6, 1, 5, 5), 0.2),
        "conv1_b": u(ks[1], (6,), 0.1),
        "conv2_w": u(ks[2], (16, 6, 5, 5), 0.1),
        "conv2_b": u(ks[3], (16,), 0.1),
        "fc1_w": u(ks[4], (flat, 120), 0.05),
        "fc1_b": u(ks[5], (120,), 0.05),
        "fc2_w": u(ks[6], (120, 84), 0.1),
        "fc2_b": u(ks[7], (84,), 0.1),
        "fc3_w": u(ks[8], (84, 10), 0.1),
        "fc3_b": u(ks[9], (10,), 0.1),
    }


def lenet_reference(params, x):
    """Pure-JAX (XLA) reference matching the PyTorch module semantics."""
    def conv(inp, w, b, padding):
        y = jax.lax.conv_general_dilated(
            inp, w, window_strides=(1, 1), padding=padding,
            dimension_numbers=("NCHW", "OIHW", "NCHW"))
        return y + b.reshape(1, -1, 1, 1)

    def pool(inp):
        n, c, h, w = inp.shape
        return inp.reshape(n, c, h // 2, 2, w // 2, 2).mean(axis=(3, 5))

    y = jax.nn.sigmoid(conv(x, params["conv1_w"], params["conv1_b"],
                            [(2, 2), (2, 2)]))
    y = pool(y)
    y = jax.nn.sigmoid(conv(y, params["conv2_w"], params["conv2_b"],
                            [(0, 0), (0, 0)]))
    y = pool(y)
    y = y.reshape(x.shape[0], -1)
    y = jax.nn.sigmoid(y @ params["fc1_w"] + params["fc1_b"])
    y = jax.nn.sigmoid(y @ params["fc2_w"] + params["fc2_b"])
    return y @ params["fc3_w"] + params["fc3_b"]


if __name__ == "__main__":
    key = jax.random.PRNGKey(0)
    k_param, k_x1, k_x2 = jax.random.split(key, 3)

    # input_shape=(1, 1, 28, 28) in the nn.Module => Linear(400, 120).
    params = init_lenet_params(k_param, input_hw=(28, 28))
    forward = make_lenet_forward(params)        # weights repacked/uploaded once

    # Batch of 2 (B=1 per grid step, 2 parallel grid steps).
    x2 = jax.random.normal(k_x1, (2, 1, 28, 28), dtype=jnp.float32)
    out2 = jax.block_until_ready(forward(x2))
    assert out2.shape == (2, 10)
    ref2 = lenet_reference(params, x2)
    if not jnp.allclose(out2, ref2, atol=2e-3, rtol=2e-3):
        raise AssertionError("Pallas LeNet output mismatch (batch=2)")

    # Batch of 8 reuses the cached device weights (B=4 images per grid step,
    # batched FC head, 2 parallel grid steps).
    x8 = jax.random.normal(k_x2, (8, 1, 28, 28), dtype=jnp.float32)
    out8 = jax.block_until_ready(forward(x8))
    assert out8.shape == (8, 10)
    ref8 = lenet_reference(params, x8)
    if not jnp.allclose(out8, ref8, atol=2e-3, rtol=2e-3):
        raise AssertionError("Pallas LeNet output mismatch (batch=8)")

    print("KERNEL_OK")
</pallas_src>

<mosaic_0001>
module attributes {stable_mosaic.version = 11 : i64} {
  func.func @_lenet_kernel(%arg0: i32, %arg1: memref<1x28x160xf32, #tpu.memory_space<vmem>>, %arg2: memref<160x168xf32, #tpu.memory_space<vmem>>, %arg3: memref<1x168xf32, #tpu.memory_space<vmem>>, %arg4: memref<14x28xf32, #tpu.memory_space<vmem>>, %arg5: memref<168x84xf32, #tpu.memory_space<vmem>>, %arg6: memref<5x84x160xf32, #tpu.memory_space<vmem>>, %arg7: memref<1x160xf32, #tpu.memory_space<vmem>>, %arg8: memref<10x160x120xf32, #tpu.memory_space<vmem>>, %arg9: memref<1x120xf32, #tpu.memory_space<vmem>>, %arg10: memref<120x84xf32, #tpu.memory_space<vmem>>, %arg11: memref<1x84xf32, #tpu.memory_space<vmem>>, %arg12: memref<84x128xf32, #tpu.memory_space<vmem>>, %arg13: memref<1x128xf32, #tpu.memory_space<vmem>>, %arg14: memref<1x1x128xf32, #tpu.memory_space<vmem>>, %arg15: memref<14x84xf32, #tpu.memory_space<vmem>>, %arg16: memref<10x160xf32, #tpu.memory_space<vmem>>, %arg17: memref<1x120xf32, #tpu.memory_space<vmem>>) attributes {dimension_semantics = [#tpu.dimension_semantics<parallel>], iteration_bounds = array<i64: 2>, scalar_prefetch = 0 : i64, scratch_operands = 3 : i64, tpu.core_type = #tpu.core_type<tc>, window_params = [{transform_indices = @transform_0, window_bounds = array<i64: 1, 28, 160>}, {pipeline_mode = #tpu.pipeline_mode<synchronous>, transform_indices = @transform_1, window_bounds = array<i64: 160, 168>}, {pipeline_mode = #tpu.pipeline_mode<synchronous>, transform_indices = @transform_2, window_bounds = array<i64: 1, 168>}, {pipeline_mode = #tpu.pipeline_mode<synchronous>, transform_indices = @transform_3, window_bounds = array<i64: 14, 28>}, {pipeline_mode = #tpu.pipeline_mode<synchronous>, transform_indices = @transform_4, window_bounds = array<i64: 168, 84>}, {pipeline_mode = #tpu.pipeline_mode<synchronous>, transform_indices = @transform_5, window_bounds = array<i64: 5, 84, 160>}, {pipeline_mode = #tpu.pipeline_mode<synchronous>, transform_indices = @transform_6, window_bounds = array<i64: 1, 160>}, {pipeline_mode = #tpu.pipeline_mode<synchronous>, transform_indices = @transform_7, window_bounds = array<i64: 10, 160, 120>}, {pipeline_mode = #tpu.pipeline_mode<synchronous>, transform_indices = @transform_8, window_bounds = array<i64: 1, 120>}, {pipeline_mode = #tpu.pipeline_mode<synchronous>, transform_indices = @transform_9, window_bounds = array<i64: 120, 84>}, {pipeline_mode = #tpu.pipeline_mode<synchronous>, transform_indices = @transform_10, window_bounds = array<i64: 1, 84>}, {pipeline_mode = #tpu.pipeline_mode<synchronous>, transform_indices = @transform_11, window_bounds = array<i64: 84, 128>}, {pipeline_mode = #tpu.pipeline_mode<synchronous>, transform_indices = @transform_12, window_bounds = array<i64: 1, 128>}, {transform_indices = @transform_13, window_bounds = array<i64: 1, 1, 128>}]} {
    %c0 = arith.constant 0 : index
    %c0_0 = arith.constant 0 : index
    %c0_1 = arith.constant 0 : index
    %0 = vector.load %arg1[%c0, %c0_0, %c0_1] : memref<1x28x160xf32, #tpu.memory_space<vmem>>, vector<1x28x160xf32>
    %1 = vector.shape_cast %0 : vector<1x28x160xf32> to vector<28x160xf32>
    %c0_2 = arith.constant 0 : index
    %c0_3 = arith.constant 0 : index
    %2 = vector.load %arg2[%c0_2, %c0_3] : memref<160x168xf32, #tpu.memory_space<vmem>>, vector<160x168xf32>
    %cst = arith.constant dense<0.000000e+00> : vector<28x168xf32>
    %3 = tpu.matmul %1, %2, %cst {dimension_numbers = #tpu.dot_dimension_numbers<[1], [0], [0], [1], [0, 0, 1, 1], [], []>} : vector<28x160xf32>, vector<160x168xf32>, vector<28x168xf32> -> vector<28x168xf32>
    %c0_4 = arith.constant 0 : index
    %c0_5 = arith.constant 0 : index
    %4 = vector.load %arg3[%c0_4, %c0_5] : memref<1x168xf32, #tpu.memory_space<vmem>>, vector<1x168xf32>
    %5 = vector.broadcast %4 : vector<1x168xf32> to vector<28x168xf32>
    %6 = arith.addf %3, %5 : vector<28x168xf32>
    %cst_6 = arith.constant 5.000000e-01 : f32
    %7 = vector.broadcast %cst_6 : f32 to vector<28x168xf32>
    %8 = arith.mulf %7, %6 : vector<28x168xf32>
    %9 = math.tanh %8 : vector<28x168xf32>
    %cst_7 = arith.constant 5.000000e-01 : f32
    %10 = vector.broadcast %cst_7 : f32 to vector<28x168xf32>
    %11 = arith.mulf %10, %9 : vector<28x168xf32>
    %cst_8 = arith.constant 5.000000e-01 : f32
    %12 = vector.broadcast %cst_8 : f32 to vector<28x168xf32>
    %13 = arith.addf %11, %12 : vector<28x168xf32>
    %c0_9 = arith.constant 0 : index
    %c0_10 = arith.constant 0 : index
    %14 = vector.load %arg4[%c0_9, %c0_10] : memref<14x28xf32, #tpu.memory_space<vmem>>, vector<14x28xf32>
    %cst_11 = arith.constant dense<0.000000e+00> : vector<14x168xf32>
    %15 = tpu.matmul %14, %13, %cst_11 {dimension_numbers = #tpu.dot_dimension_numbers<[1], [0], [0], [1], [0, 0, 1, 1], [], []>} : vector<14x28xf32>, vector<28x168xf32>, vector<14x168xf32> -> vector<14x168xf32>
    %c0_12 = arith.constant 0 : index
    %c0_13 = arith.constant 0 : index
    %16 = vector.load %arg5[%c0_12, %c0_13] : memref<168x84xf32, #tpu.memory_space<vmem>>, vector<168x84xf32>
    %cst_14 = arith.constant dense<0.000000e+00> : vector<14x84xf32>
    %17 = tpu.matmul %15, %16, %cst_14 {dimension_numbers = #tpu.dot_dimension_numbers<[1], [0], [0], [1], [0, 0, 1, 1], [], []>} : vector<14x168xf32>, vector<168x84xf32>, vector<14x84xf32> -> vector<14x84xf32>
    %c0_15 = arith.constant 0 : index
    %c0_16 = arith.constant 0 : index
    %18 = vector.load %arg15[%c0_15, %c0_16] : memref<14x84xf32, #tpu.memory_space<vmem>>, vector<14x84xf32>
    tpu.vector_store %arg15[%c0_15, %c0_16], %17 {strides = array<i32>} : memref<14x84xf32, #tpu.memory_space<vmem>>, vector<14x84xf32>,
    %c0_17 = arith.constant 0 : index
    %c0_18 = arith.constant 0 : index
    %19 = vector.load %arg15[%c0_17, %c0_18] : memref<14x84xf32, #tpu.memory_space<vmem>>, vector<10x84xf32>
    %c0_19 = arith.constant 0 : index
    %c0_20 = arith.constant 0 : index
    %c0_21 = arith.constant 0 : index
    %20 = vector.load %arg6[%c0_19, %c0_20, %c0_21] : memref<5x84x160xf32, #tpu.memory_space<vmem>>, vector<1x84x160xf32>
    %21 = vector.shape_cast %20 : vector<1x84x160xf32> to vector<84x160xf32>
    %cst_22 = arith.constant dense<0.000000e+00> : vector<10x160xf32>
    %22 = tpu.matmul %19, %21, %cst_22 {dimension_numbers = #tpu.dot_dimension_numbers<[1], [0], [0], [1], [0, 0, 1, 1], [], []>} : vector<10x84xf32>, vector<84x160xf32>, vector<10x160xf32> -> vector<10x160xf32>
    %c0_23 = arith.constant 0 : index
    %c0_24 = arith.constant 0 : index
    %23 = vector.load %arg16[%c0_23, %c0_24] : memref<10x160xf32, #tpu.memory_space<vmem>>, vector<10x160xf32>
    tpu.vector_store %arg16[%c0_23, %c0_24], %22 {strides = array<i32>} : memref<10x160xf32, #tpu.memory_space<vmem>>, vector<10x160xf32>,
    %c0_25 = arith.constant 0 : index
    %c0_26 = arith.constant 0 : index
    %24 = vector.load %arg16[%c0_25, %c0_26] : memref<10x160xf32, #tpu.memory_space<vmem>>, vector<10x160xf32>
    %c1 = arith.constant 1 : index
    %c0_27 = arith.constant 0 : index
    %25 = vector.load %arg15[%c1, %c0_27] : memref<14x84xf32, #tpu.memory_space<vmem>>, vector<10x84xf32>
    %c1_28 = arith.constant 1 : index
    %c0_29 = arith.constant 0 : index
    %c0_30 = arith.constant 0 : index
    %26 = vector.load %arg6[%c1_28, %c0_29, %c0_30] : memref<5x84x160xf32, #tpu.memory_space<vmem>>, vector<1x84x160xf32>
    %27 = vector.shape_cast %26 : vector<1x84x160xf32> to vector<84x160xf32>
    %cst_31 = arith.constant dense<0.000000e+00> : vector<10x160xf32>
    %28 = tpu.matmul %25, %27, %cst_31 {dimension_numbers = #tpu.dot_dimension_numbers<[1], [0], [0], [1], [0, 0, 1, 1], [], []>} : vector<10x84xf32>, vector<84x160xf32>, vector<10x160xf32> -> vector<10x160xf32>
    %29 = arith.addf %24, %28 : vector<10x160xf32>
    %c0_32 = arith.constant 0 : index
    %c0_33 = arith.constant 0 : index
    %30 = vector.load %arg16[%c0_32, %c0_33] : memref<10x160xf32, #tpu.memory_space<vmem>>, vector<10x160xf32>
    tpu.vector_store %arg16[%c0_32, %c0_33], %29 {strides = array<i32>} : memref<10x160xf32, #tpu.memory_space<vmem>>, vector<10x160xf32>,
    %c0_34 = arith.constant 0 : index
    %c0_35 = arith.constant 0 : index
    %31 = vector.load %arg16[%c0_34, %c0_35] : memref<10x160xf32, #tpu.memory_space<vmem>>, vector<10x160xf32>
    %c2 = arith.constant 2 : index
    %c0_36 = arith.constant 0 : index
    %32 = vector.load %arg15[%c2, %c0_36] : memref<14x84xf32, #tpu.memory_space<vmem>>, vector<10x84xf32>
    %c2_37 = arith.constant 2 : index
    %c0_38 = arith.constant 0 : index
    %c0_39 = arith.constant 0 : index
    %33 = vector.load %arg6[%c2_37, %c0_38, %c0_39] : memref<5x84x160xf32, #tpu.memory_space<vmem>>, vector<1x84x160xf32>
    %34 = vector.shape_cast %33 : vector<1x84x160xf32> to vector<84x160xf32>
    %cst_40 = arith.constant dense<0.000000e+00> : vector<10x160xf32>
    %35 = tpu.matmul %32, %34, %cst_40 {dimension_numbers = #tpu.dot_dimension_numbers<[1], [0], [0], [1], [0, 0, 1, 1], [], []>} : vector<10x84xf32>, vector<84x160xf32>, vector<10x160xf32> -> vector<10x160xf32>
    %36 = arith.addf %31, %35 : vector<10x160xf32>
    %c0_41 = arith.constant 0 : index
    %c0_42 = arith.constant 0 : index
    %37 = vector.load %arg16[%c0_41, %c0_42] : memref<10x160xf32, #tpu.memory_space<vmem>>, vector<10x160xf32>
    tpu.vector_store %arg16[%c0_41, %c0_42], %36 {strides = array<i32>} : memref<10x160xf32, #tpu.memory_space<vmem>>, vector<10x160xf32>,
    %c0_43 = arith.constant 0 : index
    %c0_44 = arith.constant 0 : index
    %38 = vector.load %arg16[%c0_43, %c0_44] : memref<10x160xf32, #tpu.memory_space<vmem>>, vector<10x160xf32>
    %c3 = arith.constant 3 : index
    %c0_45 = arith.constant 0 : index
    %39 = vector.load %arg15[%c3, %c0_45] : memref<14x84xf32, #tpu.memory_space<vmem>>, vector<10x84xf32>
    %c3_46 = arith.constant 3 : index
    %c0_47 = arith.constant 0 : index
    %c0_48 = arith.constant 0 : index
    %40 = vector.load %arg6[%c3_46, %c0_47, %c0_48] : memref<5x84x160xf32, #tpu.memory_space<vmem>>, vector<1x84x160xf32>
    %41 = vector.shape_cast %40 : vector<1x84x160xf32> to vector<84x160xf32>
    %cst_49 = arith.constant dense<0.000000e+00> : vector<10x160xf32>
    %42 = tpu.matmul %39, %41, %cst_49 {dimension_numbers = #tpu.dot_dimension_numbers<[1], [0], [0], [1], [0, 0, 1, 1], [], []>} : vector<10x84xf32>, vector<84x160xf32>, vector<10x160xf32> -> vector<10x160xf32>
    %43 = arith.addf %38, %42 : vector<10x160xf32>
    %c0_50 = arith.constant 0 : index
    %c0_51 = arith.constant 0 : index
    %44 = vector.load %arg16[%c0_50, %c0_51] : memref<10x160xf32, #tpu.memory_space<vmem>>, vector<10x160xf32>
    tpu.vector_store %arg16[%c0_50, %c0_51], %43 {strides = array<i32>} : memref<10x160xf32, #tpu.memory_space<vmem>>, vector<10x160xf32>,
    %c0_52 = arith.constant 0 : index
    %c0_53 = arith.constant 0 : index
    %45 = vector.load %arg16[%c0_52, %c0_53] : memref<10x160xf32, #tpu.memory_space<vmem>>, vector<10x160xf32>
    %c4 = arith.constant 4 : index
    %c0_54 = arith.constant 0 : index
    %46 = vector.load %arg15[%c4, %c0_54] : memref<14x84xf32, #tpu.memory_space<vmem>>, vector<10x84xf32>
    %c4_55 = arith.constant 4 : index
    %c0_56 = arith.constant 0 : index
    %c0_57 = arith.constant 0 : index
    %47 = vector.load %arg6[%c4_55, %c0_56, %c0_57] : memref<5x84x160xf32, #tpu.memory_space<vmem>>, vector<1x84x160xf32>
    %48 = vector.shape_cast %47 : vector<1x84x160xf32> to vector<84x160xf32>
    %cst_58 = arith.constant dense<0.000000e+00> : vector<10x160xf32>
    %49 = tpu.matmul %46, %48, %cst_58 {dimension_numbers = #tpu.dot_dimension_numbers<[1], [0], [0], [1], [0, 0, 1, 1], [], []>} : vector<10x84xf32>, vector<84x160xf32>, vector<10x160xf32> -> vector<10x160xf32>
    %50 = arith.addf %45, %49 : vector<10x160xf32>
    %c0_59 = arith.constant 0 : index
    %c0_60 = arith.constant 0 : index
    %51 = vector.load %arg16[%c0_59, %c0_60] : memref<10x160xf32, #tpu.memory_space<vmem>>, vector<10x160xf32>
    tpu.vector_store %arg16[%c0_59, %c0_60], %50 {strides = array<i32>} : memref<10x160xf32, #tpu.memory_space<vmem>>, vector<10x160xf32>,
    %c0_61 = arith.constant 0 : index
    %c0_62 = arith.constant 0 : index
    %52 = vector.load %arg16[%c0_61, %c0_62] : memref<10x160xf32, #tpu.memory_space<vmem>>, vector<10x160xf32>
    %c0_63 = arith.constant 0 : index
    %c0_64 = arith.constant 0 : index
    %53 = vector.load %arg7[%c0_63, %c0_64] : memref<1x160xf32, #tpu.memory_space<vmem>>, vector<1x160xf32>
    %54 = vector.broadcast %53 : vector<1x160xf32> to vector<10x160xf32>
    %55 = arith.addf %52, %54 : vector<10x160xf32>
    %cst_65 = arith.constant 5.000000e-01 : f32
    %56 = vector.broadcast %cst_65 : f32 to vector<10x160xf32>
    %57 = arith.mulf %56, %55 : vector<10x160xf32>
    %58 = math.tanh %57 : vector<10x160xf32>
    %cst_66 = arith.constant 5.000000e-01 : f32
    %59 = vector.broadcast %cst_66 : f32 to vector<10x160xf32>
    %60 = arith.mulf %59, %58 : vector<10x160xf32>
    %cst_67 = arith.constant 5.000000e-01 : f32
    %61 = vector.broadcast %cst_67 : f32 to vector<10x160xf32>
    %62 = arith.addf %60, %61 : vector<10x160xf32>
    %c0_68 = arith.constant 0 : index
    %c0_69 = arith.constant 0 : index
    %63 = vector.load %arg16[%c0_68, %c0_69] : memref<10x160xf32, #tpu.memory_space<vmem>>, vector<10x160xf32>
    tpu.vector_store %arg16[%c0_68, %c0_69], %62 {strides = array<i32>} : memref<10x160xf32, #tpu.memory_space<vmem>>, vector<10x160xf32>,
    %c0_70 = arith.constant 0 : index
    %c0_71 = arith.constant 0 : index
    %64 = vector.load %arg16[%c0_70, %c0_71] : memref<10x160xf32, #tpu.memory_space<vmem>>, vector<1x160xf32>
    %c0_72 = arith.constant 0 : index
    %c0_73 = arith.constant 0 : index
    %c0_74 = arith.constant 0 : index
    %65 = vector.load %arg8[%c0_72, %c0_73, %c0_74] : memref<10x160x120xf32, #tpu.memory_space<vmem>>, vector<1x160x120xf32>
    %66 = vector.shape_cast %65 : vector<1x160x120xf32> to vector<160x120xf32>
    %cst_75 = arith.constant dense<0.000000e+00> : vector<1x120xf32>
    %67 = tpu.matmul %64, %66, %cst_75 {dimension_numbers = #tpu.dot_dimension_numbers<[1], [0], [0], [1], [0, 0, 1, 1], [], []>} : vector<1x160xf32>, vector<160x120xf32>, vector<1x120xf32> -> vector<1x120xf32>
    %c0_76 = arith.constant 0 : index
    %c0_77 = arith.constant 0 : index
    %68 = vector.load %arg17[%c0_76, %c0_77] : memref<1x120xf32, #tpu.memory_space<vmem>>, vector<1x120xf32>
    tpu.vector_store %arg17[%c0_76, %c0_77], %67 {strides = array<i32>} : memref<1x120xf32, #tpu.memory_space<vmem>>, vector<1x120xf32>,
    %c0_78 = arith.constant 0 : index
    %c0_79 = arith.constant 0 : index
    %69 = vector.load %arg17[%c0_78, %c0_79] : memref<1x120xf32, #tpu.memory_space<vmem>>, vector<1x120xf32>
    %c1_80 = arith.constant 1 : index
    %c0_81 = arith.constant 0 : index
    %70 = vector.load %arg16[%c1_80, %c0_81] : memref<10x160xf32, #tpu.memory_space<vmem>>, vector<1x160xf32>
    %c1_82 = arith.constant 1 : index
    %c0_83 = arith.constant 0 : index
    %c0_84 = arith.constant 0 : index
    %71 = vector.load %arg8[%c1_82, %c0_83, %c0_84] : memref<10x160x120xf32, #tpu.memory_space<vmem>>, vector<1x160x120xf32>
    %72 = vector.shape_cast %71 : vector<1x160x120xf32> to vector<160x120xf32>
    %cst_85 = arith.constant dense<0.000000e+00> : vector<1x120xf32>
    %73 = tpu.matmul %70, %72, %cst_85 {dimension_numbers = #tpu.dot_dimension_numbers<[1], [0], [0], [1], [0, 0, 1, 1], [], []>} : vector<1x160xf32>, vector<160x120xf32>, vector<1x120xf32> -> vector<1x120xf32>
    %74 = arith.addf %69, %73 : vector<1x120xf32>
    %c0_86 = arith.constant 0 : index
    %c0_87 = arith.constant 0 : index
    %75 = vector.load %arg17[%c0_86, %c0_87] : memref<1x120xf32, #tpu.memory_space<vmem>>, vector<1x120xf32>
    tpu.vector_store %arg17[%c0_86, %c0_87], %74 {strides = array<i32>} : memref<1x120xf32, #tpu.memory_space<vmem>>, vector<1x120xf32>,
    %c0_88 = arith.constant 0 : index
    %c0_89 = arith.constant 0 : index
    %76 = vector.load %arg17[%c0_88, %c0_89] : memref<1x120xf32, #tpu.memory_space<vmem>>, vector<1x120xf32>
    %c2_90 = arith.constant 2 : index
    %c0_91 = arith.constant 0 : index
    %77 = vector.load %arg16[%c2_90, %c0_91] : memref<10x160xf32, #tpu.memory_space<vmem>>, vector<1x160xf32>
    %c2_92 = arith.constant 2 : index
    %c0_93 = arith.constant 0 : index
    %c0_94 = arith.constant 0 : index
    %78 = vector.load %arg8[%c2_92, %c0_93, %c0_94] : memref<10x160x120xf32, #tpu.memory_space<vmem>>, vector<1x160x120xf32>
    %79 = vector.shape_cast %78 : vector<1x160x120xf32> to vector<160x120xf32>
    %cst_95 = arith.constant dense<0.000000e+00> : vector<1x120xf32>
    %80 = tpu.matmul %77, %79, %cst_95 {dimension_numbers = #tpu.dot_dimension_numbers<[1], [0], [0], [1], [0, 0, 1, 1], [], []>} : vector<1x160xf32>, vector<160x120xf32>, vector<1x120xf32> -> vector<1x120xf32>
    %81 = arith.addf %76, %80 : vector<1x120xf32>
    %c0_96 = arith.constant 0 : index
    %c0_97 = arith.constant 0 : index
    %82 = vector.load %arg17[%c0_96, %c0_97] : memref<1x120xf32, #tpu.memory_space<vmem>>, vector<1x120xf32>
    tpu.vector_store %arg17[%c0_96, %c0_97], %81 {strides = array<i32>} : memref<1x120xf32, #tpu.memory_space<vmem>>, vector<1x120xf32>,
    %c0_98 = arith.constant 0 : index
    %c0_99 = arith.constant 0 : index
    %83 = vector.load %arg17[%c0_98, %c0_99] : memref<1x120xf32, #tpu.memory_space<vmem>>, vector<1x120xf32>
    %c3_100 = arith.constant 3 : index
    %c0_101 = arith.constant 0 : index
    %84 = vector.load %arg16[%c3_100, %c0_101] : memref<10x160xf32, #tpu.memory_space<vmem>>, vector<1x160xf32>
    %c3_102 = arith.constant 3 : index
    %c0_103 = arith.constant 0 : index
    %c0_104 = arith.constant 0 : index
    %85 = vector.load %arg8[%c3_102, %c0_103, %c0_104] : memref<10x160x120xf32, #tpu.memory_space<vmem>>, vector<1x160x120xf32>
    %86 = vector.shape_cast %85 : vector<1x160x120xf32> to vector<160x120xf32>
    %cst_105 = arith.constant dense<0.000000e+00> : vector<1x120xf32>
    %87 = tpu.matmul %84, %86, %cst_105 {dimension_numbers = #tpu.dot_dimension_numbers<[1], [0], [0], [1], [0, 0, 1, 1], [], []>} : vector<1x160xf32>, vector<160x120xf32>, vector<1x120xf32> -> vector<1x120xf32>
    %88 = arith.addf %83, %87 : vector<1x120xf32>
    %c0_106 = arith.constant 0 : index
    %c0_107 = arith.constant 0 : index
    %89 = vector.load %arg17[%c0_106, %c0_107] : memref<1x120xf32, #tpu.memory_space<vmem>>, vector<1x120xf32>
    tpu.vector_store %arg17[%c0_106, %c0_107], %88 {strides = array<i32>} : memref<1x120xf32, #tpu.memory_space<vmem>>, vector<1x120xf32>,
    %c0_108 = arith.constant 0 : index
    %c0_109 = arith.constant 0 : index
    %90 = vector.load %arg17[%c0_108, %c0_109] : memref<1x120xf32, #tpu.memory_space<vmem>>, vector<1x120xf32>
    %c4_110 = arith.constant 4 : index
    %c0_111 = arith.constant 0 : index
    %91 = vector.load %arg16[%c4_110, %c0_111] : memref<10x160xf32, #tpu.memory_space<vmem>>, vector<1x160xf32>
    %c4_112 = arith.constant 4 : index
    %c0_113 = arith.constant 0 : index
    %c0_114 = arith.constant 0 : index
    %92 = vector.load %arg8[%c4_112, %c0_113, %c0_114] : memref<10x160x120xf32, #tpu.memory_space<vmem>>, vector<1x160x120xf32>
    %93 = vector.shape_cast %92 : vector<1x160x120xf32> to vector<160x120xf32>
    %cst_115 = arith.constant dense<0.000000e+00> : vector<1x120xf32>
    %94 = tpu.matmul %91, %93, %cst_115 {dimension_numbers = #tpu.dot_dimension_numbers<[1], [0], [0], [1], [0, 0, 1, 1], [], []>} : vector<1x160xf32>, vector<160x120xf32>, vector<1x120xf32> -> vector<1x120xf32>
    %95 = arith.addf %90, %94 : vector<1x120xf32>
    %c0_116 = arith.constant 0 : index
    %c0_117 = arith.constant 0 : index
    %96 = vector.load %arg17[%c0_116, %c0_117] : memref<1x120xf32, #tpu.memory_space<vmem>>, vector<1x120xf32>
    tpu.vector_store %arg17[%c0_116, %c0_117], %95 {strides = array<i32>} : memref<1x120xf32, #tpu.memory_space<vmem>>, vector<1x120xf32>,
    %c0_118 = arith.constant 0 : index
    %c0_119 = arith.constant 0 : index
    %97 = vector.load %arg17[%c0_118, %c0_119] : memref<1x120xf32, #tpu.memory_space<vmem>>, vector<1x120xf32>
    %c5 = arith.constant 5 : index
    %c0_120 = arith.constant 0 : index
    %98 = vector.load %arg16[%c5, %c0_120] : memref<10x160xf32, #tpu.memory_space<vmem>>, vector<1x160xf32>
    %c5_121 = arith.constant 5 : index
    %c0_122 = arith.constant 0 : index
    %c0_123 = arith.constant 0 : index
    %99 = vector.load %arg8[%c5_121, %c0_122, %c0_123] : memref<10x160x120xf32, #tpu.memory_space<vmem>>, vector<1x160x120xf32>
    %100 = vector.shape_cast %99 : vector<1x160x120xf32> to vector<160x120xf32>
    %cst_124 = arith.constant dense<0.000000e+00> : vector<1x120xf32>
    %101 = tpu.matmul %98, %100, %cst_124 {dimension_numbers = #tpu.dot_dimension_numbers<[1], [0], [0], [1], [0, 0, 1, 1], [], []>} : vector<1x160xf32>, vector<160x120xf32>, vector<1x120xf32> -> vector<1x120xf32>
    %102 = arith.addf %97, %101 : vector<1x120xf32>
    %c0_125 = arith.constant 0 : index
    %c0_126 = arith.constant 0 : index
    %103 = vector.load %arg17[%c0_125, %c0_126] : memref<1x120xf32, #tpu.memory_space<vmem>>, vector<1x120xf32>
    tpu.vector_store %arg17[%c0_125, %c0_126], %102 {strides = array<i32>} : memref<1x120xf32, #tpu.memory_space<vmem>>, vector<1x120xf32>,
    %c0_127 = arith.constant 0 : index
    %c0_128 = arith.constant 0 : index
    %104 = vector.load %arg17[%c0_127, %c0_128] : memref<1x120xf32, #tpu.memory_space<vmem>>, vector<1x120xf32>
    %c6 = arith.constant 6 : index
    %c0_129 = arith.constant 0 : index
    %105 = vector.load %arg16[%c6, %c0_129] : memref<10x160xf32, #tpu.memory_space<vmem>>, vector<1x160xf32>
    %c6_130 = arith.constant 6 : index
    %c0_131 = arith.constant 0 : index
    %c0_132 = arith.constant 0 : index
    %106 = vector.load %arg8[%c6_130, %c0_131, %c0_132] : memref<10x160x120xf32, #tpu.memory_space<vmem>>, vector<1x160x120xf32>
    %107 = vector.shape_cast %106 : vector<1x160x120xf32> to vector<160x120xf32>
    %cst_133 = arith.constant dense<0.000000e+00> : vector<1x120xf32>
    %108 = tpu.matmul %105, %107, %cst_133 {dimension_numbers = #tpu.dot_dimension_numbers<[1], [0], [0], [1], [0, 0, 1, 1], [], []>} : vector<1x160xf32>, vector<160x120xf32>, vector<1x120xf32> -> vector<1x120xf32>
    %109 = arith.addf %104, %108 : vector<1x120xf32>
    %c0_134 = arith.constant 0 : index
    %c0_135 = arith.constant 0 : index
    %110 = vector.load %arg17[%c0_134, %c0_135] : memref<1x120xf32, #tpu.memory_space<vmem>>, vector<1x120xf32>
    tpu.vector_store %arg17[%c0_134, %c0_135], %109 {strides = array<i32>} : memref<1x120xf32, #tpu.memory_space<vmem>>, vector<1x120xf32>,
    %c0_136 = arith.constant 0 : index
    %c0_137 = arith.constant 0 : index
    %111 = vector.load %arg17[%c0_136, %c0_137] : memref<1x120xf32, #tpu.memory_space<vmem>>, vector<1x120xf32>
    %c7 = arith.constant 7 : index
    %c0_138 = arith.constant 0 : index
    %112 = vector.load %arg16[%c7, %c0_138] : memref<10x160xf32, #tpu.memory_space<vmem>>, vector<1x160xf32>
    %c7_139 = arith.constant 7 : index
    %c0_140 = arith.constant 0 : index
    %c0_141 = arith.constant 0 : index
    %113 = vector.load %arg8[%c7_139, %c0_140, %c0_141] : memref<10x160x120xf32, #tpu.memory_space<vmem>>, vector<1x160x120xf32>
    %114 = vector.shape_cast %113 : vector<1x160x120xf32> to vector<160x120xf32>
    %cst_142 = arith.constant dense<0.000000e+00> : vector<1x120xf32>
    %115 = tpu.matmul %112, %114, %cst_142 {dimension_numbers = #tpu.dot_dimension_numbers<[1], [0], [0], [1], [0, 0, 1, 1], [], []>} : vector<1x160xf32>, vector<160x120xf32>, vector<1x120xf32> -> vector<1x120xf32>
    %116 = arith.addf %111, %115 : vector<1x120xf32>
    %c0_143 = arith.constant 0 : index
    %c0_144 = arith.constant 0 : index
    %117 = vector.load %arg17[%c0_143, %c0_144] : memref<1x120xf32, #tpu.memory_space<vmem>>, vector<1x120xf32>
    tpu.vector_store %arg17[%c0_143, %c0_144], %116 {strides = array<i32>} : memref<1x120xf32, #tpu.memory_space<vmem>>, vector<1x120xf32>,
    %c0_145 = arith.constant 0 : index
    %c0_146 = arith.constant 0 : index
    %118 = vector.load %arg17[%c0_145, %c0_146] : memref<1x120xf32, #tpu.memory_space<vmem>>, vector<1x120xf32>
    %c8 = arith.constant 8 : index
    %c0_147 = arith.constant 0 : index
    %119 = vector.load %arg16[%c8, %c0_147] : memref<10x160xf32, #tpu.memory_space<vmem>>, vector<1x160xf32>
    %c8_148 = arith.constant 8 : index
    %c0_149 = arith.constant 0 : index
    %c0_150 = arith.constant 0 : index
    %120 = vector.load %arg8[%c8_148, %c0_149, %c0_150] : memref<10x160x120xf32, #tpu.memory_space<vmem>>, vector<1x160x120xf32>
    %121 = vector.shape_cast %120 : vector<1x160x120xf32> to vector<160x120xf32>
    %cst_151 = arith.constant dense<0.000000e+00> : vector<1x120xf32>
    %122 = tpu.matmul %119, %121, %cst_151 {dimension_numbers = #tpu.dot_dimension_numbers<[1], [0], [0], [1], [0, 0, 1, 1], [], []>} : vector<1x160xf32>, vector<160x120xf32>, vector<1x120xf32> -> vector<1x120xf32>
    %123 = arith.addf %118, %122 : vector<1x120xf32>
    %c0_152 = arith.constant 0 : index
    %c0_153 = arith.constant 0 : index
    %124 = vector.load %arg17[%c0_152, %c0_153] : memref<1x120xf32, #tpu.memory_space<vmem>>, vector<1x120xf32>
    tpu.vector_store %arg17[%c0_152, %c0_153], %123 {strides = array<i32>} : memref<1x120xf32, #tpu.memory_space<vmem>>, vector<1x120xf32>,
    %c0_154 = arith.constant 0 : index
    %c0_155 = arith.constant 0 : index
    %125 = vector.load %arg17[%c0_154, %c0_155] : memref<1x120xf32, #tpu.memory_space<vmem>>, vector<1x120xf32>
    %c9 = arith.constant 9 : index
    %c0_156 = arith.constant 0 : index
    %126 = vector.load %arg16[%c9, %c0_156] : memref<10x160xf32, #tpu.memory_space<vmem>>, vector<1x160xf32>
    %c9_157 = arith.constant 9 : index
    %c0_158 = arith.constant 0 : index
    %c0_159 = arith.constant 0 : index
    %127 = vector.load %arg8[%c9_157, %c0_158, %c0_159] : memref<10x160x120xf32, #tpu.memory_space<vmem>>, vector<1x160x120xf32>
    %128 = vector.shape_cast %127 : vector<1x160x120xf32> to vector<160x120xf32>
    %cst_160 = arith.constant dense<0.000000e+00> : vector<1x120xf32>
    %129 = tpu.matmul %126, %128, %cst_160 {dimension_numbers = #tpu.dot_dimension_numbers<[1], [0], [0], [1], [0, 0, 1, 1], [], []>} : vector<1x160xf32>, vector<160x120xf32>, vector<1x120xf32> -> vector<1x120xf32>
    %130 = arith.addf %125, %129 : vector<1x120xf32>
    %c0_161 = arith.constant 0 : index
    %c0_162 = arith.constant 0 : index
    %131 = vector.load %arg17[%c0_161, %c0_162] : memref<1x120xf32, #tpu.memory_space<vmem>>, vector<1x120xf32>
    tpu.vector_store %arg17[%c0_161, %c0_162], %130 {strides = array<i32>} : memref<1x120xf32, #tpu.memory_space<vmem>>, vector<1x120xf32>,
    %c0_163 = arith.constant 0 : index
    %c0_164 = arith.constant 0 : index
    %132 = vector.load %arg17[%c0_163, %c0_164] : memref<1x120xf32, #tpu.memory_space<vmem>>, vector<1x120xf32>
    %c0_165 = arith.constant 0 : index
    %c0_166 = arith.constant 0 : index
    %133 = vector.load %arg9[%c0_165, %c0_166] : memref<1x120xf32, #tpu.memory_space<vmem>>, vector<1x120xf32>
    %134 = arith.addf %132, %133 : vector<1x120xf32>
    %cst_167 = arith.constant 5.000000e-01 : f32
    %135 = vector.broadcast %cst_167 : f32 to vector<1x120xf32>
    %136 = arith.mulf %135, %134 : vector<1x120xf32>
    %137 = math.tanh %136 : vector<1x120xf32>
    %cst_168 = arith.constant 5.000000e-01 : f32
    %138 = vector.broadcast %cst_168 : f32 to vector<1x120xf32>
    %139 = arith.mulf %138, %137 : vector<1x120xf32>
    %cst_169 = arith.constant 5.000000e-01 : f32
    %140 = vector.broadcast %cst_169 : f32 to vector<1x120xf32>
    %141 = arith.addf %139, %140 : vector<1x120xf32>
    %c0_170 = arith.constant 0 : index
    %c0_171 = arith.constant 0 : index
    %142 = vector.load %arg10[%c0_170, %c0_171] : memref<120x84xf32, #tpu.memory_space<vmem>>, vector<120x84xf32>
    %cst_172 = arith.constant dense<0.000000e+00> : vector<1x84xf32>
    %143 = tpu.matmul %141, %142, %cst_172 {dimension_numbers = #tpu.dot_dimension_numbers<[1], [0], [0], [1], [0, 0, 1, 1], [], []>} : vector<1x120xf32>, vector<120x84xf32>, vector<1x84xf32> -> vector<1x84xf32>
    %c0_173 = arith.constant 0 : index
    %c0_174 = arith.constant 0 : index
    %144 = vector.load %arg11[%c0_173, %c0_174] : memref<1x84xf32, #tpu.memory_space<vmem>>, vector<1x84xf32>
    %145 = arith.addf %143, %144 : vector<1x84xf32>
    %cst_175 = arith.constant 5.000000e-01 : f32
    %146 = vector.broadcast %cst_175 : f32 to vector<1x84xf32>
    %147 = arith.mulf %146, %145 : vector<1x84xf32>
    %148 = math.tanh %147 : vector<1x84xf32>
    %cst_176 = arith.constant 5.000000e-01 : f32
    %149 = vector.broadcast %cst_176 : f32 to vector<1x84xf32>
    %150 = arith.mulf %149, %148 : vector<1x84xf32>
    %cst_177 = arith.constant 5.000000e-01 : f32
    %151 = vector.broadcast %cst_177 : f32 to vector<1x84xf32>
    %152 = arith.addf %150, %151 : vector<1x84xf32>
    %c0_178 = arith.constant 0 : index
    %c0_179 = arith.constant 0 : index
    %153 = vector.load %arg12[%c0_178, %c0_179] : memref<84x128xf32, #tpu.memory_space<vmem>>, vector<84x128xf32>
    %cst_180 = arith.constant dense<0.000000e+00> : vector<1x128xf32>
    %154 = tpu.matmul %152, %153, %cst_180 {dimension_numbers = #tpu.dot_dimension_numbers<[1], [0], [0], [1], [0, 0, 1, 1], [], []>} : vector<1x84xf32>, vector<84x128xf32>, vector<1x128xf32> -> vector<1x128xf32>
    %c0_181 = arith.constant 0 : index
    %c0_182 = arith.constant 0 : index
    %155 = vector.load %arg13[%c0_181, %c0_182] : memref<1x128xf32, #tpu.memory_space<vmem>>, vector<1x128xf32>
    %156 = arith.addf %154, %155 : vector<1x128xf32>
    %c0_183 = arith.constant 0 : index
    %c0_184 = arith.constant 0 : index
    %c0_185 = arith.constant 0 : index
    %157 = vector.load %arg14[%c0_183, %c0_184, %c0_185] : memref<1x1x128xf32, #tpu.memory_space<vmem>>, vector<1x1x128xf32>
    %158 = vector.shape_cast %157 : vector<1x1x128xf32> to vector<1x128xf32>
    %159 = vector.shape_cast %156 : vector<1x128xf32> to vector<1x1x128xf32>
    tpu.vector_store %arg14[%c0_183, %c0_184, %c0_185], %159 {strides = array<i32>} : memref<1x1x128xf32, #tpu.memory_space<vmem>>, vector<1x1x128xf32>,
    return
  }
  func.func @transform_0(%arg0: i32) -> (i32, i32, i32) {
    %c0_i32 = arith.constant 0 : i32
    %c0_i32_0 = arith.constant 0 : i32
    %c0_i32_1 = arith.constant 0 : i32
    return %arg0, %c0_i32, %c0_i32_0 : i32, i32, i32
  }
  func.func @transform_1(%arg0: i32) -> (i32, i32) {
    %c0_i32 = arith.constant 0 : i32
    %c0_i32_0 = arith.constant 0 : i32
    %c0_i32_1 = arith.constant 0 : i32
    return %c0_i32, %c0_i32_0 : i32, i32
  }
  func.func @transform_2(%arg0: i32) -> (i32, i32) {
    %c0_i32 = arith.constant 0 : i32
    %c0_i32_0 = arith.constant 0 : i32
    %c0_i32_1 = arith.constant 0 : i32
    return %c0_i32, %c0_i32_0 : i32, i32
  }
  func.func @transform_3(%arg0: i32) -> (i32, i32) {
    %c0_i32 = arith.constant 0 : i32
    %c0_i32_0 = arith.constant 0 : i32
    %c0_i32_1 = arith.constant 0 : i32
    return %c0_i32, %c0_i32_0 : i32, i32
  }
  func.func @transform_4(%arg0: i32) -> (i32, i32) {
    %c0_i32 = arith.constant 0 : i32
    %c0_i32_0 = arith.constant 0 : i32
    %c0_i32_1 = arith.constant 0 : i32
    return %c0_i32, %c0_i32_0 : i32, i32
  }
  func.func @transform_5(%arg0: i32) -> (i32, i32, i32) {
    %c0_i32 = arith.constant 0 : i32
    %c0_i32_0 = arith.constant 0 : i32
    %c0_i32_1 = arith.constant 0 : i32
    %c0_i32_2 = arith.constant 0 : i32
    return %c0_i32, %c0_i32_0, %c0_i32_1 : i32, i32, i32
  }
  func.func @transform_6(%arg0: i32) -> (i32, i32) {
    %c0_i32 = arith.constant 0 : i32
    %c0_i32_0 = arith.constant 0 : i32
    %c0_i32_1 = arith.constant 0 : i32
    return %c0_i32, %c0_i32_0 : i32, i32
  }
  func.func @transform_7(%arg0: i32) -> (i32, i32, i32) {
    %c0_i32 = arith.constant 0 : i32
    %c0_i32_0 = arith.constant 0 : i32
    %c0_i32_1 = arith.constant 0 : i32
    %c0_i32_2 = arith.constant 0 : i32
    return %c0_i32, %c0_i32_0, %c0_i32_1 : i32, i32, i32
  }
  func.func @transform_8(%arg0: i32) -> (i32, i32) {
    %c0_i32 = arith.constant 0 : i32
    %c0_i32_0 = arith.constant 0 : i32
    %c0_i32_1 = arith.constant 0 : i32
    return %c0_i32, %c0_i32_0 : i32, i32
  }
  func.func @transform_9(%arg0: i32) -> (i32, i32) {
    %c0_i32 = arith.constant 0 : i32
    %c0_i32_0 = arith.constant 0 : i32
    %c0_i32_1 = arith.constant 0 : i32
    return %c0_i32, %c0_i32_0 : i32, i32
  }
  func.func @transform_10(%arg0: i32) -> (i32, i32) {
    %c0_i32 = arith.constant 0 : i32
    %c0_i32_0 = arith.constant 0 : i32
    %c0_i32_1 = arith.constant 0 : i32
    return %c0_i32, %c0_i32_0 : i32, i32
  }
  func.func @transform_11(%arg0: i32) -> (i32, i32) {
    %c0_i32 = arith.constant 0 : i32
    %c0_i32_0 = arith.constant 0 : i32
    %c0_i32_1 = arith.constant 0 : i32
    return %c0_i32, %c0_i32_0 : i32, i32
  }
  func.func @transform_12(%arg0: i32) -> (i32, i32) {
    %c0_i32 = arith.constant 0 : i32
    %c0_i32_0 = arith.constant 0 : i32
    %c0_i32_1 = arith.constant 0 : i32
    return %c0_i32, %c0_i32_0 : i32, i32
  }
  func.func @transform_13(%arg0: i32) -> (i32, i32, i32) {
    %c0_i32 = arith.constant 0 : i32
    %c0_i32_0 = arith.constant 0 : i32
    %c0_i32_1 = arith.constant 0 : i32
    return %arg0, %c0_i32, %c0_i32_0 : i32, i32, i32
  }
}

</mosaic_0001>

<bundles_post_ra>
// kernel: _lenet_forward_impl.1
= control target key start
LH: loop header
LB: loop body
LE: loop exit
PB: predicated region body
PF: predicated region fallthrough
CT: control target
= control target key end

     0   :  { %18 = vsyncpa [#allocation6], 0  ;;  %s4126_s0 = inlined_call_operand.vmem [shape: f32[2,28,160], index: 0, kind: input, shape index: {}]   ;;  %s4127_s1 = inlined_call_operand.vmem [shape: f32[160,168], index: 1, kind: input, shape index: {}]   ;;  %s4128_s2 = inlined_call_operand.vmem [shape: f32[1,168], index: 2, kind: input, shape index: {}]   ;;  %s4129_s3 = inlined_call_operand.vmem [shape: f32[14,28], index: 3, kind: input, shape index: {}]   ;;  %s4130_s4 = inlined_call_operand.vmem [shape: f32[168,84], index: 4, kind: input, shape index: {}]   ;;  %s4131_s5 = inlined_call_operand.vmem [shape: f32[5,84,160], index: 5, kind: input, shape index: {}]   ;;  %s4132_s6 = inlined_call_operand.vmem [shape: f32[1,160], index: 6, kind: input, shape index: {}]   ;;  %s4133_s7 = inlined_call_operand.vmem [shape: f32[10,160,120], index: 7, kind: input, shape index: {}]   ;;  %s4134_s8 = inlined_call_operand.vmem [shape: f32[1,120], index: 8, kind: input, shape index: {}]   ;;  %s4135_s9 = inlined_call_operand.vmem [shape: f32[120,84], index: 9, kind: input, shape index: {}]   ;;  %s4136_s10 = inlined_call_operand.vmem [shape: f32[1,84], index: 10, kind: input, shape index: {}]   ;;  %s4137_s11 = inlined_call_operand.vmem [shape: f32[84,128], index: 11, kind: input, shape index: {}]   ;;  %s4138_s12 = inlined_call_operand.vmem [shape: f32[1,128], index: 12, kind: input, shape index: {}]   ;;  %s4139_s13 = inlined_call_operand.hbm [shape: f32[2,1,128], index: 13, kind: output, shape index: {}]  }
   0x1   :  { %20 = vsyncpa [#allocation6 + $0x1], 0  ;;  %s2706_s25 = smov 0   ;;  %s2708_s26 = smov 0  }
   0x2   :  { %s2710_s27 = smov 0   ;;  %s2712_s28 = smov 0  }
   0x3 LB: > { %4144 = sst [smem:[#allocation8_spill]] %s2630_s27  ;;  %s2727_s29 = sadd.s32 4294967295, %s2634_s28   ;;  %s2634_s28 = sphi %s2712_s28, %s4151_s28   ;;  %s2630_s27 = sphi %s2710_s27, %s4153_s27   ;;  %s2626_s26 = sphi %s2708_s26, %s4155_s26   ;;  %s2622_s25 = sphi %s2706_s25, %s4154_s25  }
   0x4   : > { %s2169_s30 = sadd.s32 4294967294, %s2634_s28   ;;  %s2731_s14 = sadd.s32 1, %s2634_s28  }
   0x5   : > { %4145 = sst [smem:[#allocation9_spill]] %s2731_s14  ;;  %s311_s15 = sadd.s32 1, %s2630_s27 }
   0x6   : > { %s308_s16 = ssub.s32 %s2634_s28, %s2731_s14  ;;  %p321_p0 = scmp.ne.s32.totalorder %s2630_s27, %s2626_s26 }
   0x7   : > { %p309_p1 = scmp.eq.s32.totalorder %s308_s16, 0  ;;  %p322_p2 = scmp.eq.s32.totalorder %s2727_s29, 1 }
   0x8   : > { %p327_p3 = scmp.ne.s32.totalorder %s2626_s26, %s2622_s25  ;;  %p328_p4 = scmp.eq.s32.totalorder %s2169_s30, 1 }
   0x9   : > { %s2742_s17 = scalar_select %p309_p1, %s2630_s27, %s311_s15  }
   0xa   : > { %p2744_p5 = por %p322_p2, %p321_p0  ;;  %p2748_p6 = por %p328_p4, %p327_p3 }
   0xb   : > { %4146 = sst [smem:[#allocation10_spill]] %s2742_s17  ;;  %p2172_p7 = scmp.ge.s32.totalorder %s2634_s28, 1 }
   0xc   : > { %s4148_s19 = scalar_select %p2748_p6, 1, 0 }
   0xd   : > { %p390_p8 = scmp.lt.s32.totalorder %s2634_s28, 3 }
   0xe   : > { %4149 = sst [smem:[#allocation11_spill]] %s4148_s19 }
   0xf   : > { %p391_p9 = pnand %p2172_p7, %p390_p8 }
  0x10   : > { %p433_p10 = scmp.lt.s32.totalorder (!%p391_p9), %s2727_s29, 1  ;;  %s431_s30 = sand.u32 (!%p391_p9), 1, %s2626_s26  }
  0x11   : > { %394 = sbr.rel (%p391_p9) target bundleno = 1248 (0x4e0), region = 72  ;;  %s2110_s27 = scalar_lea.hbm (!%p391_p9), %s4139_s13, %s2727_s29 }
  0x12   : > { %s432_s16 = scalar_lea.vmem (!%p391_p9), [#allocation5], %s431_s30  ;;  %s2102_s21 = scalar_lea.sflag (!%p391_p9), [#allocation6], %s431_s30 }
  0x13   : > { %s2112_s19 = sshll.u32 (!%p391_p9), %s432_s16, 4  ;;  %s2113_s19 = int_to_ptr.vmem [resolvable:$true] %s2112_s19 }
  0x16   : > { %v476_v0 = vld [vmem:[%s4127_s1 + $0xf0] sm:$0xff]  ;;  %v477_v1 = vld [vmem:[%s4127_s1 + $0xf8] sm:$0xff]  ;;  %v474_v2 = vld [vmem:[%s4127_s1 + $0xe0] sm:$0xff]  ;;  %s2786_s20 = scalar_select %p433_p10, %s2727_s29, 1  ;;  %vm492_vm0 = vcmask 261120   ;;  %vm662_vm1 = vcmask 1043456  }
  0x17   : > { %505 = vmatpush.msra.mxu0 %v476_v0  ;;  %563 = vmatpush.msra.mxu2 %v477_v1  ;;  %v475_v3 = vld [vmem:[%s4127_s1 + $0xe8] sm:$0xff]  ;;  %v472_v4 = vld [vmem:[%s4127_s1 + $0xd0] sm:$0xff]  ;;  %v473_v5 = vld [vmem:[%s4127_s1 + $0xd8] sm:$0xff]  ;;  %vm655_vm2 = vcmask 228352   ;;  %vm736_vm3 = vcmask 326656   ;;  %vm789_vm4 = vcmask 687104  }
  0x18   : > { %v470_v6 = vld [vmem:[%s4127_s1 + $0xc0] sm:$0xff]  ;;  %v471_v7 = vld [vmem:[%s4127_s1 + $0xc8] sm:$0xff]  ;;  %v468_v8 = vld [vmem:[%s4127_s1 + $0xb0] sm:$0xff]  ;;  %s2504_s14 = sshll.u32 %s2786_s20, 6  ;;  %vm791_vm5 = vcmask 685056   ;;  %vm878_vm6 = vcmask 254976  }
  0x19   : > { %506 = vmatpush.msra.mxu0 %v474_v2  ;;  %564 = vmatpush.msra.mxu2 %v475_v3  ;;  %v469_v9 = vld [vmem:[%s4127_s1 + $0xb8] sm:$0xff]  ;;  %v466_v10 = vld [vmem:[%s4127_s1 + $0xa0] sm:$0xff]  ;;  %v467_v11 = vld [vmem:[%s4127_s1 + $0xa8] sm:$0xff]  ;;  %s2840_s24 = scalar_lea.vmem %s4126_s0, %s2504_s14  ;;  %vm1361_vm7 = vcmask 974848   ;;  %vm2034_vm8 = vcmask 982016   ;;  %s2592_s20 = scalar_lea.hbm %s4139_s13, 2 }
  0x1a   : > { %v484_v12 = vld [vmem:[%s4127_s1 + $0x130] sm:$0xff]  ;;  %v485_v13 = vld [vmem:[%s4127_s1 + $0x138] sm:$0xff]  ;;  %v482_v16 = vld [vmem:[%s4127_s1 + $0x120] sm:$0xff] }
  0x1b   : > { %507 = vmatpush.msra.mxu0 %v472_v4  ;;  %565 = vmatpush.msra.mxu2 %v473_v5  ;;  %v464_v14 = vld [vmem:[%s4127_s1 + $0x90] sm:$0xff]  ;;  %v465_v15 = vld [vmem:[%s4127_s1 + $0x98] sm:$0xff]  ;;  %v483_v17 = vld [vmem:[%s4127_s1 + $0x128] sm:$0xff] }
  0x1c   : > { %546 = vmatpush.msra.mxu1 %v484_v12  ;;  %604 = vmatpush.msra.mxu3 %v485_v13  ;;  %v480_v18 = vld [vmem:[%s4127_s1 + $0x110] sm:$0xff]  ;;  %v462_v19 = vld [vmem:[%s4127_s1 + $0x80] sm:$0xff]  ;;  %v463_v20 = vld [vmem:[%s4127_s1 + $0x88] sm:$0xff] }
  0x1d   : > { %508 = vmatpush.msra.mxu0 %v470_v6  ;;  %566 = vmatpush.msra.mxu2 %v471_v7  ;;  %v481_v21 = vld [vmem:[%s4127_s1 + $0x118] sm:$0xff]  ;;  %v478_v22 = vld [vmem:[%s4127_s1 + $0x100] sm:$0xff]  ;;  %v479_v23 = vld [vmem:[%s4127_s1 + $0x108] sm:$0xff] }
  0x1e   : > { %547 = vmatpush.msra.mxu1 %v482_v16  ;;  %605 = vmatpush.msra.mxu3 %v483_v17  ;;  %v460_v24 = vld [vmem:[%s4127_s1 + $0x70] sm:$0xff]  ;;  %v461_v25 = vld [vmem:[%s4127_s1 + $0x78] sm:$0xff]  ;;  %v439_v26 = vld [vmem:[%s2840_s24 + $0x8] sm:$0xff] }
  0x1f   : > { %509 = vmatpush.msra.mxu0 %v468_v8  ;;  %567 = vmatpush.msra.mxu2 %v469_v9  ;;  %v458_v27 = vld [vmem:[%s4127_s1 + $0x60] sm:$0xff]  ;;  %v459_v28 = vld [vmem:[%s4127_s1 + $0x68] sm:$0xff]  ;;  %v456_v29 = vld [vmem:[%s4127_s1 + $0x50] sm:$0xff] }
  0x20   : > { %548 = vmatpush.msra.mxu1 %v480_v18  ;;  %606 = vmatpush.msra.mxu3 %v481_v21  ;;  %v457_v30 = vld [vmem:[%s4127_s1 + $0x58] sm:$0xff]  ;;  %v454_v31 = vld [vmem:[%s4127_s1 + $0x40] sm:$0xff]  ;;  %v455_v32 = vld [vmem:[%s4127_s1 + $0x48] sm:$0xff] }
  0x21   : > { %510 = vmatpush.msra.mxu0 %v466_v10  ;;  %568 = vmatpush.msra.mxu2 %v467_v11  ;;  %v452_v33 = vld [vmem:[%s4127_s1 + $0x30] sm:$0xff]  ;;  %v453_v34 = vld [vmem:[%s4127_s1 + $0x38] sm:$0xff]  ;;  %v450_v36 = vld [vmem:[%s4127_s1 + $0x20] sm:$0xff] }
  0x22   : > { %549 = vmatpush.msra.mxu1 %v478_v22  ;;  %607 = vmatpush.msra.mxu3 %v479_v23  ;;  %v441_v35 = vld [vmem:[%s2840_s24 + $0x18] sm:$0xff]  ;;  %v451_v37 = vld [vmem:[%s4127_s1 + $0x28] sm:$0xff]  ;;  %v448_v38 = vld [vmem:[%s4127_s1 + $0x10] sm:$0xff] }
  0x23   : > { %511 = vmatpush.msra.mxu0 %v464_v14  ;;  %569 = vmatpush.msra.mxu2 %v465_v15  ;;  %v449_v39 = vld [vmem:[%s4127_s1 + $0x18] sm:$0xff]  ;;  %v446_v40 = vld [vmem:[%s4127_s1] sm:$0xff]  ;;  %v447_v41 = vld [vmem:[%s4127_s1 + $0x8] sm:$0xff] }
  0x24   : > { %2175 = vmatmul.msk.f32.vlgmr.msra.gmra.mxu1 %vm492_vm0, %v439_v26  ;;  %2179 = vmatmul.msk.f32.vlgmr.msra.gmra.mxu3 %vm492_vm0, %v439_v26  ;;  %v438_v42 = vld [vmem:[%s2840_s24] sm:$0xff]  ;;  %v443_v43 = vld [vmem:[%s2840_s24 + $0x28] sm:$0xff]  ;;  %v440_v44 = vld [vmem:[%s2840_s24 + $0x10] sm:$0xff] }
  0x25   : > { %512 = vmatpush.msra.mxu0 %v462_v19  ;;  %570 = vmatpush.msra.mxu2 %v463_v20  ;;  %v445_v45 = vld [vmem:[%s2840_s24 + $0x38] sm:$0xf]  ;;  %v442_v46 = vld [vmem:[%s2840_s24 + $0x20] sm:$0xff]  ;;  %v444_v47 = vld [vmem:[%s2840_s24 + $0x30] sm:$0xf]  ;;  %s2114_s24 = sshll.u32 %s2110_s27, 4  ;;  %s2115_s24 = int_to_ptr.hbm [resolvable:$true] %s2114_s24 }
  0x26   : > { %v486_v55 = vld [vmem:[%s4128_s2] sm:$0x3]  ;;  %v730_v23 = vld [vmem:[%s4130_s4 + $0x78] sm:$0xff]  ;;  %s2586_s22 = sshra.s32 %s2115_s24, 4  ;;  %s2587_s22 = int_to_ptr.hbm [resolvable:$true] %s2586_s22 }
  0x27   : > { %513 = vmatpush.msra.mxu0 %v460_v24  ;;  %571 = vmatpush.msra.mxu2 %v461_v25  ;;  %v488_v58 = vperm.slane %v486_v55, 0  ;;  %v489_v1 = vperm.slane %v486_v55, 1  ;;  %v729_v24 = vld [vmem:[%s4130_s4 + $0x70] sm:$0xff]  ;;  %v722_v55 = vld [vmem:[%s4130_s4 + $0x38] sm:$0xff]  ;;  %s2588_s23 = scalar_lea.hbm %s2587_s22, 1  ;;  %p2593_p0 = scmp.lt.s32.totalorder %s2587_s22, %s4139_s13 }
  0x28   : > { %p2589_p11 = scmp.ne.s32.totalorder %s2587_s22, %s2588_s23  ;;  %p2594_p1 = scmp.lt.s32.totalorder %s2592_s20, %s2588_s23 }
  0x29   : > { %514 = vmatpush.msra.mxu0 %v458_v27  ;;  %572 = vmatpush.msra.mxu2 %v459_v28  ;;  %v728_v28 = vld [vmem:[%s4130_s4 + $0x68] sm:$0xff] }
  0x2a   : > { %p2590_p12 = pnand %p2589_p11, %p2744_p5  ;;  %p2595_p2 = por %p2594_p1, %p2593_p0 }
  0x2b   : > { %515 = vmatpush.msra.mxu0 %v456_v29  ;;  %573 = vmatpush.msra.mxu2 %v457_v30 }
  0x2c   : > { %2176 = vmatmul.msk.f32.gmra.mxu1 %vm492_vm0, %v441_v35  ;;  %2180 = vmatmul.msk.f32.gmra.mxu3 %vm492_vm0, %v441_v35  ;;  %v726_v35 = vld [vmem:[%s4130_s4 + $0x58] sm:$0xff]  ;;  %p2591_p13 = pneg %p2590_p12 }
  0x2d   : > { %516 = vmatpush.msra.mxu0 %v454_v31  ;;  %574 = vmatpush.msra.mxu2 %v455_v32  ;;  %v727_v31 = vld [vmem:[%s4130_s4 + $0x60] sm:$0xff] }
  0x2e   : > { %p2596_p3 = pnand %p2595_p2, %p2591_p13 }
  0x2f   : > { %517 = vmatpush.msra.mxu0 %v452_v33  ;;  %575 = vmatpush.msra.mxu2 %v453_v34 }
  0x31   : > { %518 = vmatpush.msra.mxu0 %v450_v36  ;;  %576 = vmatpush.msra.mxu2 %v451_v37 }
  0x33   : > { %519 = vmatpush.msra.mxu0 %v448_v38  ;;  %577 = vmatpush.msra.mxu2 %v449_v39  ;;  %v725_v38 = vld [vmem:[%s4130_s4 + $0x50] sm:$0xff] }
  0x34   : > { %2177 = vmatmul.msk.f32.gmra.mxu1 %vm492_vm0, %v443_v43  ;;  %2181 = vmatmul.msk.f32.gmra.mxu3 %vm492_vm0, %v443_v43  ;;  %v724_v43 = vld [vmem:[%s4130_s4 + $0x48] sm:$0xff] }
  0x35   : > { %520 = vmatpush.msra.mxu0 %v446_v40  ;;  %578 = vmatpush.msra.mxu2 %v447_v41 }
  0x36   : > { %521 = vmatmul.f32.vlgmr.msra.gmra.mxu0 %v438_v42  ;;  %579 = vmatmul.f32.vlgmr.msra.gmra.mxu2 %v438_v42 }
  0x37   : > { %743 = vmatpush.msrb.mxu0 %v730_v23  ;;  %v805_v23 = vld [vmem:[%s4131_s5 + $0x50] sm:$0xff] }
  0x39   : > { %744 = vmatpush.msrb.mxu0 %v729_v24  ;;  %v2243_v24 = vld [vmem:[%s4131_s5 + $0x1f0] sm:$0xff] }
  0x3b   : > { %745 = vmatpush.msrb.mxu0 %v728_v28  ;;  %v803_v28 = vld [vmem:[%s4131_s5 + $0x40] sm:$0xff] }
  0x3c   : > { %2178 = vmatmul.msk.f32.gmra.mxu1 %vm492_vm0, %v445_v45  ;;  %2182 = vmatmul.msk.f32.gmra.mxu3 %vm492_vm0, %v445_v45 }
  0x3d   : > { %746 = vmatpush.msrb.mxu0 %v727_v31  ;;  %v801_v31 = vld [vmem:[%s4131_s5 + $0x30] sm:$0xff] }
  0x3e   : > { %524 = vmatmul.f32.gmra.mxu0 %v440_v44  ;;  %582 = vmatmul.f32.gmra.mxu2 %v440_v44 }
  0x3f   : > { %747 = vmatpush.msrb.mxu0 %v726_v35  ;;  %v797_v35 = vld [vmem:[%s4131_s5 + $0x10] sm:$0xff] }
  0x41   : > { %748 = vmatpush.msrb.mxu0 %v725_v38 }
  0x43   : > { %749 = vmatpush.msrb.mxu0 %v724_v43  ;;  %v796_v43 = vld [vmem:[%s4131_s5 + $0x8] sm:$0xff] }
  0x46   : > { %527 = vmatmul.f32.gmra.mxu0 %v442_v46  ;;  %585 = vmatmul.f32.gmra.mxu2 %v442_v46 }
  0x4e   : > { %530 = vmatmul.f32.gmra.mxu0 %v444_v47  ;;  %588 = vmatmul.f32.gmra.mxu2 %v444_v47  ;;  %v723_v47 = vld [vmem:[%s4130_s4 + $0x40] sm:$0xff] }
  0x4f   : > { %750 = vmatpush.msrb.mxu0 %v723_v47  ;;  %v2237_v47 = vld [vmem:[%s4131_s5 + $0x1c0] sm:$0xff] }
  0x51   : > { %751 = vmatpush.msrb.mxu0 %v722_v55  ;;  %v2233_v55 = vld [vmem:[%s4131_s5 + $0x1a0] sm:$0xff] }
  0xa1   : > { %v551_v48 = vpop.f32.mrf.mxu1 }
  0xa7   : > { %v609_v50 = vpop.f32.mrf.mxu3 }
  0xa9   : > { %v554_v51 = vpop.f32.mrf.mxu1 }
  0xaf   : > { %v612_v54 = vpop.f32.mrf.mxu3 }
  0xb1   : > { %v557_v57 = vpop.f32.mrf.mxu1 }
  0xb3   : > { %v522_v49 = vpop.f32.mrf.mxu0 }
  0xb4   : > { %v523_v0 = vadd.f32 %v522_v49, %v488_v58 }
  0xb6   : > { %v552_v9 = vadd.f32 %v551_v48, %v523_v0  ;;  %v733_v0 = vld [vmem:[%s4130_s4 + $0x90] sm:$0xff] }
  0xb7   : > { %v615_v63 = vpop.f32.mrf.mxu3 }
  0xb8   : > { %v621_v16 = vmul.f32 0.5, %v552_v9  ;;  %v731_v9 = vld [vmem:[%s4130_s4 + $0x80] sm:$0xff] }
  0xb9   : > { %v580_v52 = vpop.f32.mrf.mxu2  ;;  %v560_v8 = vpop.f32.mrf.mxu1 }
  0xba   : > { %v581_v12 = vadd.f32 %v580_v52, %v489_v1 }
  0xbb   : > { %v525_v53 = vpop.f32.mrf.mxu0 }
  0xbc   : > { %v526_v61 = vadd.f32 %v525_v53, %v488_v58  ;;  %v610_v20 = vadd.f32 %v609_v50, %v581_v12  ;;  %v813_v12 = vld [vmem:[%s4131_s5 + $0x90] sm:$0xff] }
  0xbe   : > { %v555_v2 = vadd.f32 %v554_v51, %v526_v61  ;;  %v622_v29 = vmul.f32 0.5, %v610_v20  ;;  %v734_v61 = vld [vmem:[%s4130_s4 + $0x98] sm:$0xff]  ;;  %v807_v20 = vld [vmem:[%s4131_s5 + $0x60] sm:$0xff] }
  0xbf   : > { %v618_v19 = vpop.f32.mrf.mxu3 }
  0xc0   : > { %v623_v11 = vmul.f32 0.5, %v555_v2  ;;  %v719_v2 = vld [vmem:[%s4130_s4 + $0x20] sm:$0xff] }
  0xc1   : > { %v583_v56 = vpop.f32.mrf.mxu2 }
  0xc2   : > { %v584_v6 = vadd.f32 %v583_v56, %v489_v1  ;;  %v735_v56 = vld [vmem:[%s4130_s4 + $0xa0] sm:$0xff] }
  0xc3   : > { %v528_v59 = vpop.f32.mrf.mxu0 }
  0xc4   : > { %v529_v60 = vadd.f32 %v528_v59, %v488_v58  ;;  %v613_v15 = vadd.f32 %v612_v54, %v584_v6  ;;  %v653_v59 = vld [vmem:[%s4129_s3] sm:$0xff]  ;;  %v717_v6 = vld [vmem:[%s4130_s4 + $0x10] sm:$0xff] }
  0xc6   : > { %v558_v62 = vadd.f32 %v557_v57, %v529_v60  ;;  %v624_v25 = vmul.f32 0.5, %v613_v15  ;;  %v721_v60 = vld [vmem:[%s4130_s4 + $0x30] sm:$0xff]  ;;  %v812_v15 = vld [vmem:[%s4131_s5 + $0x88] sm:$0xff] }
  0xc7   : > { %752 = vmatpush.msrb.mxu0 %v721_v60  ;;  %v2210_v60 = vld [vmem:[%s4131_s5 + $0x118] sm:$0xff] }
  0xc8   : > { %v625_v4 = vmul.f32 0.5, %v558_v62 }
  0xc9   : > { %v586_v3 = vpop.f32.mrf.mxu2 }
  0xca   : > { %v587_v5 = vadd.f32 %v586_v3, %v489_v1  ;;  %2544 = vtanh.f32 %v625_v4  ;;  %v732_v3 = vld [vmem:[%s4130_s4 + $0x88] sm:$0xff]  ;;  %v718_v4 = vld [vmem:[%s4130_s4 + $0x18] sm:$0xff] }
  0xcb   : > { %v531_v7 = vpop.f32.mrf.mxu0  ;;  %2546 = vtanh.f32 %v623_v11  ;;  %v816_v11 = vld [vmem:[%s4131_s5 + $0xa8] sm:$0xf] }
  0xcc   : > { %v532_v10 = vadd.f32 %v531_v7, %v488_v58  ;;  %v616_v13 = vadd.f32 %v615_v63, %v587_v5  ;;  %v720_v63 = vld [vmem:[%s4130_s4 + $0x28] sm:$0xff]  ;;  %2194 = vmatpush.msk.msrb.mxu2 %vm662_vm1, %v816_v11  ;;  %v2301_v11 = vld [vmem:[%s4131_s5 + $0x360] sm:$0xf] }
  0xcd   : > { %753 = vmatpush.msrb.mxu0 %v720_v63  ;;  %v654_v5 = vld [vmem:[%s4129_s3 + $0x8] sm:$0x3f]  ;;  %v2229_v63 = vld [vmem:[%s4131_s5 + $0x180] sm:$0xff] }
  0xce   : > { %v561_v14 = vadd.f32 %v560_v8, %v532_v10  ;;  %v626_v21 = vmul.f32 0.5, %v616_v13  ;;  %v716_v7 = vld [vmem:[%s4130_s4 + $0x8] sm:$0xff]  ;;  %v715_v8 = vld [vmem:[%s4130_s4] sm:$0xff]  ;;  %v814_v13 = vld [vmem:[%s4131_s5 + $0x98] sm:$0xff] }
  0xcf   : > { %754 = vmatpush.msrb.mxu0 %v719_v2  ;;  %v815_v10 = vld [vmem:[%s4131_s5 + $0xa0] sm:$0xf]  ;;  %858 = vmatpush.msrb.mxu2 %v814_v13  ;;  %v2230_v13 = vld [vmem:[%s4131_s5 + $0x188] sm:$0xff] }
  0xd0   : > { %v627_v17 = vmul.f32 0.5, %v561_v14  ;;  %v2545_v26 = vpop.eup %2544  ;;  %v811_v14 = vld [vmem:[%s4131_s5 + $0x80] sm:$0xff] }
  0xd1   : > { %v589_v18 = vpop.f32.mrf.mxu2  ;;  %v2547_v32 = vpop.eup %2546  ;;  %v641_v33 = vmul.f32 0.5, %v2545_v26  ;;  %755 = vmatpush.msrb.mxu0 %v718_v4  ;;  %859 = vmatpush.msrb.mxu2 %v812_v15  ;;  %v2213_v26 = vld [vmem:[%s4131_s5 + $0x130] sm:$0xff]  ;;  %v2199_v2 = vld [vmem:[%s4131_s5 + $0xc0] sm:$0xff]  ;;  %v2206_v4 = vld [vmem:[%s4131_s5 + $0xf8] sm:$0xff] }
  0xd2   : > { %2548 = vtanh.f32 %v627_v17  ;;  %v590_v22 = vadd.f32 %v589_v18, %v489_v1  ;;  %v639_v41 = vmul.f32 0.5, %v2547_v32  ;;  %v810_v17 = vld [vmem:[%s4131_s5 + $0x78] sm:$0xff]  ;;  %v2217_v18 = vld [vmem:[%s4131_s5 + $0x150] sm:$0xf] }
  0xd3   : > { %2550 = vtanh.f32 %v621_v16  ;;  %v649_v40 = vadd.f32 0.5, %v641_v33  ;;  %756 = vmatpush.msrb.mxu0 %v717_v6  ;;  %v809_v16 = vld [vmem:[%s4131_s5 + $0x70] sm:$0xff]  ;;  %860 = vmatpush.msrb.mxu2 %v810_v17  ;;  %v802_v32 = vld [vmem:[%s4131_s5 + $0x38] sm:$0xff]  ;;  %v799_v33 = vld [vmem:[%s4131_s5 + $0x20] sm:$0xff] }
  0xd4   : > { %v619_v27 = vadd.f32 %v618_v19, %v590_v22  ;;  %2552 = vtanh.f32 %v626_v21  ;;  %v647_v49 = vadd.f32 0.5, %v639_v41  ;;  %v2245_v19 = vld [vmem:[%s4131_s5 + $0x200] sm:$0xf]  ;;  %v808_v21 = vld [vmem:[%s4131_s5 + $0x68] sm:$0xff]  ;;  %v2239_v41 = vld [vmem:[%s4131_s5 + $0x1d0] sm:$0xff] }
  0xd5   : > { %2554 = vtanh.f32 %v624_v25  ;;  %757 = vmatpush.msrb.mxu0 %v716_v7  ;;  %v2215_v22 = vld [vmem:[%s4131_s5 + $0x140] sm:$0xff]  ;;  %v806_v25 = vld [vmem:[%s4131_s5 + $0x58] sm:$0xff]  ;;  %861 = vmatpush.msrb.mxu2 %v808_v21  ;;  %v2197_v6 = vld [vmem:[%s4131_s5 + $0xb0] sm:$0xff] }
  0xd6   : > { %v628_v30 = vmul.f32 0.5, %v619_v27  ;;  %v2241_v27 = vld [vmem:[%s4131_s5 + $0x1e0] sm:$0xff]  ;;  %v2299_v15 = vld [vmem:[%s4131_s5 + $0x350] sm:$0xff]  ;;  %v2226_v21 = vld [vmem:[%s4131_s5 + $0x168] sm:$0xff] }
  0xd7   : > { %758 = vmatpush.msrb.mxu0 %v715_v8  ;;  %862 = vmatpush.msrb.mxu2 %v806_v25  ;;  %v2225_v7 = vld [vmem:[%s4131_s5 + $0x160] sm:$0xff]  ;;  %v2204_v8 = vld [vmem:[%s4131_s5 + $0xe8] sm:$0xff] }
  0xd8   : > { %v2549_v34 = vpop.eup %2548  ;;  %2556 = vtanh.f32 %v628_v30  ;;  %v2297_v17 = vld [vmem:[%s4131_s5 + $0x340] sm:$0xff] }
  0xd9   : > { %v643_v36 = vmul.f32 0.5, %v2549_v34  ;;  %v2551_v37 = vpop.eup %2550  ;;  %2558 = vtanh.f32 %v622_v29  ;;  %2247 = vmatpush.msk.msra.mxu0 %vm662_vm1, %v2245_v19  ;;  %v804_v29 = vld [vmem:[%s4131_s5 + $0x48] sm:$0xff]  ;;  %v2228_v19 = vld [vmem:[%s4131_s5 + $0x178] sm:$0xff]  ;;  %v2293_v25 = vld [vmem:[%s4131_s5 + $0x320] sm:$0xff] }
  0xda   : > { %v2553_v42 = vpop.eup %2552  ;;  %v637_v45 = vmul.f32 0.5, %v2551_v37  ;;  %863 = vmatpush.msrb.mxu2 %v804_v29  ;;  %v800_v34 = vld [vmem:[%s4131_s5 + $0x28] sm:$0xff]  ;;  %v2289_v29 = vld [vmem:[%s4131_s5 + $0x300] sm:$0xff] }
  0xdb   : > { %v651_v39 = vadd.f32 0.5, %v643_v36  ;;  %v2555_v44 = vpop.eup %2554  ;;  %v642_v50 = vmul.f32 0.5, %v2553_v42  ;;  %1022 = vmatpush.msra.mxu0 %v2243_v24  ;;  %v798_v36 = vld [vmem:[%s4131_s5 + $0x18] sm:$0xff]  ;;  %v795_v42 = vld [vmem:[%s4131_s5] sm:$0xff]  ;;  %v2265_v24 = vld [vmem:[%s4131_s5 + $0x270] sm:$0xff] }
  0xdc   : > { %v645_v53 = vadd.f32 0.5, %v637_v45  ;;  %v640_v54 = vmul.f32 0.5, %v2555_v44  ;;  %864 = vmatpush.msrb.mxu2 %v802_v32  ;;  %v2218_v44 = vld [vmem:[%s4131_s5 + $0x158] sm:$0xf]  ;;  %v2246_v45 = vld [vmem:[%s4131_s5 + $0x208] sm:$0xf] }
  0xdd   : > { %2183 = vmatpush.msk.msrb.mxu1 %vm662_vm1, %v651_v39  ;;  %v650_v57 = vadd.f32 0.5, %v642_v50  ;;  %1023 = vmatpush.msra.mxu0 %v2241_v27  ;;  %v2207_v50 = vld [vmem:[%s4131_s5 + $0x100] sm:$0xff]  ;;  %v2291_v27 = vld [vmem:[%s4131_s5 + $0x310] sm:$0xff] }
  0xde   : > { %v2557_v46 = vpop.eup %2556  ;;  %v648_v62 = vadd.f32 0.5, %v640_v54  ;;  %865 = vmatpush.msrb.mxu2 %v800_v34  ;;  %v2205_v54 = vld [vmem:[%s4131_s5 + $0xf0] sm:$0xff]  ;;  %v2285_v34 = vld [vmem:[%s4131_s5 + $0x2e0] sm:$0xff] }
  0xdf   : > { %v644_v48 = vmul.f32 0.5, %v2557_v46  ;;  %682 = vmatpush.msrb.mxu1 %v649_v40  ;;  %v2559_v51 = vpop.eup %2558  ;;  %v2211_v40 = vld [vmem:[%s4131_s5 + $0x120] sm:$0xff]  ;;  %1024 = vmatpush.msra.mxu0 %v2239_v41  ;;  %v2209_v46 = vld [vmem:[%s4131_s5 + $0x110] sm:$0xff] }
  0xe0   : > { %v638_v58 = vmul.f32 0.5, %v2559_v51  ;;  %866 = vmatpush.msrb.mxu2 %v798_v36  ;;  %v2235_v51 = vld [vmem:[%s4131_s5 + $0x1b0] sm:$0xff] }
  0xe1   : > { %v652_v52 = vadd.f32 0.5, %v644_v48  ;;  %683 = vmatpush.msrb.mxu1 %v647_v49  ;;  %1025 = vmatpush.msra.mxu0 %v2237_v47  ;;  %v2216_v48 = vld [vmem:[%s4131_s5 + $0x148] sm:$0xff]  ;;  %v2244_v49 = vld [vmem:[%s4131_s5 + $0x1f8] sm:$0xff]  ;;  %v2287_v32 = vld [vmem:[%s4131_s5 + $0x2f0] sm:$0xff] }
  0xe2   : > { %v646_v1 = vadd.f32 0.5, %v638_v58  ;;  %867 = vmatpush.msrb.mxu2 %v796_v43  ;;  %v2203_v58 = vld [vmem:[%s4131_s5 + $0xe0] sm:$0xff]  ;;  %v2283_v36 = vld [vmem:[%s4131_s5 + $0x2d0] sm:$0xff]  ;;  %v2272_v47 = vld [vmem:[%s4131_s5 + $0x2a8] sm:$0xff] }
  0xe3   : > { %684 = vmatpush.msrb.mxu1 %v645_v53  ;;  %2186 = vmatpush.msk.msrb.mxu3 %vm662_vm1, %v652_v52  ;;  %v2214_v52 = vld [vmem:[%s4131_s5 + $0x138] sm:$0xff]  ;;  %v2242_v53 = vld [vmem:[%s4131_s5 + $0x1e8] sm:$0xff] }
  0xe4   : > { %2184 = vmatmul.msk.f32.vlgmr.msrb.gmra.mxu1 %vm655_vm2, %v653_v59  ;;  %2250 = vmatpush.msk.msra.mxu2 %vm662_vm1, %v2246_v45  ;;  %v2302_v45 = vld [vmem:[%s4131_s5 + $0x368] sm:$0xf] }
  0xe5   : > { %705 = vmatpush.msrb.mxu3 %v650_v57  ;;  %777 = vmatpush.msra.mxu1 %v735_v56  ;;  %v2212_v56 = vld [vmem:[%s4131_s5 + $0x128] sm:$0xff]  ;;  %v2240_v57 = vld [vmem:[%s4131_s5 + $0x1d8] sm:$0xff] }
  0xe6   : > { %1045 = vmatpush.msra.mxu2 %v2244_v49  ;;  %1026 = vmatpush.msra.mxu0 %v2235_v51  ;;  %v2270_v49 = vld [vmem:[%s4131_s5 + $0x298] sm:$0xff]  ;;  %v2268_v51 = vld [vmem:[%s4131_s5 + $0x288] sm:$0xff] }
  0xe7   : > { %706 = vmatpush.msrb.mxu3 %v648_v62  ;;  %778 = vmatpush.msra.mxu1 %v734_v61  ;;  %v2238_v61 = vld [vmem:[%s4131_s5 + $0x1c8] sm:$0xff]  ;;  %v2201_v62 = vld [vmem:[%s4131_s5 + $0xd0] sm:$0xff] }
  0xe8   : > { %1046 = vmatpush.msra.mxu2 %v2242_v53  ;;  %1027 = vmatpush.msra.mxu0 %v2233_v55  ;;  %v2266_v53 = vld [vmem:[%s4131_s5 + $0x278] sm:$0xff] }
  0xe9   : > { %707 = vmatpush.msrb.mxu3 %v646_v1  ;;  %779 = vmatpush.msra.mxu1 %v733_v0  ;;  %v2208_v0 = vld [vmem:[%s4131_s5 + $0x108] sm:$0xff]  ;;  %v2236_v1 = vld [vmem:[%s4131_s5 + $0x1b8] sm:$0xff] }
  0xea   : > { %2187 = vmatmul.msk.f32.vlgmr.msrb.gmra.mxu3 %vm655_vm2, %v653_v59  ;;  %v2231_v59 = vld [vmem:[%s4131_s5 + $0x190] sm:$0xff]  ;;  %1047 = vmatpush.msra.mxu2 %v2240_v57 }
  0xeb   : > { %780 = vmatpush.msra.mxu1 %v732_v3  ;;  %2191 = vmatpush.msk.msra.mxu3 %vm662_vm1, %v815_v10  ;;  %v2227_v3 = vld [vmem:[%s4131_s5 + $0x170] sm:$0xff] }
  0xec   : > { %2185 = vmatmul.msk.f32.gmra.mxu1 %vm655_vm2, %v654_v5  ;;  %1028 = vmatpush.msra.mxu0 %v2231_v59  ;;  %v2273_v10 = vld [vmem:[%s4131_s5 + $0x2b0] sm:$0xf]  ;;  %v2292_v59 = vld [vmem:[%s4131_s5 + $0x318] sm:$0xff] }
  0xed   : > { %781 = vmatpush.msra.mxu1 %v731_v9  ;;  %835 = vmatpush.msra.mxu3 %v813_v12  ;;  %v2232_v9 = vld [vmem:[%s4131_s5 + $0x198] sm:$0xff] }
  0xee   : > { %1048 = vmatpush.msra.mxu2 %v2238_v61  ;;  %1029 = vmatpush.msra.mxu0 %v2229_v63  ;;  %v2202_v12 = vld [vmem:[%s4131_s5 + $0xd8] sm:$0xff]  ;;  %v2290_v61 = vld [vmem:[%s4131_s5 + $0x308] sm:$0xff] }
  0xef   : > { %836 = vmatpush.msra.mxu3 %v811_v14  ;;  %2219 = vmatpush.msk.msrb.mxu1 %vm662_vm1, %v2217_v18  ;;  %v2271_v14 = vld [vmem:[%s4131_s5 + $0x2a0] sm:$0xff]  ;;  %v2200_v18 = vld [vmem:[%s4131_s5 + $0xc8] sm:$0xff]  ;;  %v2288_v63 = vld [vmem:[%s4131_s5 + $0x2f8] sm:$0xff] }
  0xf0   : > { %1049 = vmatpush.msra.mxu2 %v2236_v1  ;;  %1030 = vmatpush.msra.mxu0 %v2227_v3  ;;  %v2286_v3 = vld [vmem:[%s4131_s5 + $0x2e8] sm:$0xff] }
  0xf1   : > { %837 = vmatpush.msra.mxu3 %v809_v16  ;;  %927 = vmatpush.msrb.mxu1 %v2215_v22  ;;  %v2269_v16 = vld [vmem:[%s4131_s5 + $0x290] sm:$0xff]  ;;  %v2267_v22 = vld [vmem:[%s4131_s5 + $0x280] sm:$0xff] }
  0xf2   : > { %2188 = vmatmul.msk.f32.gmra.mxu3 %vm655_vm2, %v654_v5  ;;  %v2234_v5 = vld [vmem:[%s4131_s5 + $0x1a8] sm:$0xff]  ;;  %1031 = vmatpush.msra.mxu0 %v2225_v7 }
  0xf3   : > { %838 = vmatpush.msra.mxu3 %v807_v20  ;;  %928 = vmatpush.msrb.mxu1 %v2213_v26  ;;  %v2198_v20 = vld [vmem:[%s4131_s5 + $0xb8] sm:$0xff]  ;;  %v2263_v26 = vld [vmem:[%s4131_s5 + $0x260] sm:$0xff]  ;;  %v2282_v7 = vld [vmem:[%s4131_s5 + $0x2c8] sm:$0xff] }
  0xf4   : > { %1050 = vmatpush.msra.mxu2 %v2234_v5  ;;  %v2284_v5 = vld [vmem:[%s4131_s5 + $0x2d8] sm:$0xff] }
  0xf5   : > { %839 = vmatpush.msra.mxu3 %v805_v23  ;;  %929 = vmatpush.msrb.mxu1 %v2211_v40  ;;  %v2295_v23 = vld [vmem:[%s4131_s5 + $0x330] sm:$0xff]  ;;  %v2281_v40 = vld [vmem:[%s4131_s5 + $0x2c0] sm:$0xff] }
  0xf6   : > { %1051 = vmatpush.msra.mxu2 %v2232_v9 }
  0xf7   : > { %840 = vmatpush.msra.mxu3 %v803_v28  ;;  %930 = vmatpush.msrb.mxu1 %v2209_v46  ;;  %v2261_v28 = vld [vmem:[%s4131_s5 + $0x250] sm:$0xff] }
  0xf8   : > { %1052 = vmatpush.msra.mxu2 %v2230_v13  ;;  %v2324_v13 = vld [vmem:[%s4133_s7 + $0x110] sm:$0xff] }
  0xf9   : > { %841 = vmatpush.msra.mxu3 %v801_v31  ;;  %931 = vmatpush.msrb.mxu1 %v2207_v50  ;;  %v2259_v31 = vld [vmem:[%s4131_s5 + $0x240] sm:$0xff]  ;;  %v2298_v50 = vld [vmem:[%s4131_s5 + $0x348] sm:$0xff] }
  0xfa   : > { %1053 = vmatpush.msra.mxu2 %v2228_v19 }
  0xfb   : > { %842 = vmatpush.msra.mxu3 %v799_v33  ;;  %932 = vmatpush.msrb.mxu1 %v2205_v54  ;;  %v2257_v33 = vld [vmem:[%s4131_s5 + $0x230] sm:$0xff]  ;;  %v2294_v54 = vld [vmem:[%s4131_s5 + $0x328] sm:$0xff] }
  0xfc   : > { %1054 = vmatpush.msra.mxu2 %v2226_v21 }
  0xfd   : > { %843 = vmatpush.msra.mxu3 %v797_v35  ;;  %933 = vmatpush.msrb.mxu1 %v2203_v58  ;;  %v2255_v35 = vld [vmem:[%s4131_s5 + $0x220] sm:$0xff]  ;;  %v2264_v58 = vld [vmem:[%s4131_s5 + $0x268] sm:$0xff] }
  0xff   : > { %844 = vmatpush.msra.mxu3 %v795_v42  ;;  %934 = vmatpush.msrb.mxu1 %v2201_v62  ;;  %v2260_v62 = vld [vmem:[%s4131_s5 + $0x248] sm:$0xff] }
 0x101   : > { %2222 = vmatpush.msk.msrb.mxu3 %vm662_vm1, %v2218_v44  ;;  %935 = vmatpush.msrb.mxu1 %v2199_v2  ;;  %v2274_v44 = vld [vmem:[%s4131_s5 + $0x2b8] sm:$0xf] }
 0x102   : > { %v2258_v2 = vld [vmem:[%s4131_s5 + $0x238] sm:$0xff] }
 0x103   : > { %950 = vmatpush.msrb.mxu3 %v2216_v48  ;;  %936 = vmatpush.msrb.mxu1 %v2197_v6  ;;  %v2300_v48 = vld [vmem:[%s4131_s5 + $0x358] sm:$0xff] }
 0x104   : > { %v2254_v6 = vld [vmem:[%s4131_s5 + $0x218] sm:$0xff] }
 0x105   : > { %951 = vmatpush.msrb.mxu3 %v2214_v52  ;;  %v2296_v52 = vld [vmem:[%s4131_s5 + $0x338] sm:$0xff] }
 0x107   : > { %952 = vmatpush.msrb.mxu3 %v2212_v56 }
 0x109   : > { %953 = vmatpush.msrb.mxu3 %v2210_v60  ;;  %v2262_v60 = vld [vmem:[%s4131_s5 + $0x258] sm:$0xff] }
 0x10b   : > { %954 = vmatpush.msrb.mxu3 %v2208_v0 }
 0x10d   : > { %955 = vmatpush.msrb.mxu3 %v2206_v4  ;;  %v2256_v4 = vld [vmem:[%s4131_s5 + $0x228] sm:$0xff] }
 0x10f   : > { %956 = vmatpush.msrb.mxu3 %v2204_v8 }
 0x111   : > { %957 = vmatpush.msrb.mxu3 %v2202_v12  ;;  %v2325_v12 = vld [vmem:[%s4133_s7 + $0x118] sm:$0xff] }
 0x113   : > { %958 = vmatpush.msrb.mxu3 %v2200_v18 }
 0x115   : > { %959 = vmatpush.msrb.mxu3 %v2198_v20  ;;  %v2319_v20 = vld [vmem:[%s4133_s7 + $0xe8] sm:$0xff] }
 0x161   : > { %v686_v30 = vpop.f32.mrf.mxu1 }
 0x162   : > { %759 = vmatmul.f32.vlgmr.msrb.gmra.mxu0 %v686_v30 }
 0x163   : > { %2303 = vmatpush.msk.msrb.mxu0 %vm662_vm1, %v2301_v11 }
 0x165   : > { %1212 = vmatpush.msrb.mxu0 %v2299_v15  ;;  %v2322_v15 = vld [vmem:[%s4133_s7 + $0x100] sm:$0xff] }
 0x167   : > { %1213 = vmatpush.msrb.mxu0 %v2297_v17  ;;  %v2320_v17 = vld [vmem:[%s4133_s7 + $0xf0] sm:$0xff] }
 0x169   : > { %v689_v37 = vpop.f32.mrf.mxu1  ;;  %1214 = vmatpush.msrb.mxu0 %v2295_v23  ;;  %v2318_v23 = vld [vmem:[%s4133_s7 + $0xe0] sm:$0xff] }
 0x16a   : > { %762 = vmatmul.f32.gmra.mxu0 %v689_v37 }
 0x16b   : > { %1215 = vmatpush.msrb.mxu0 %v2293_v25  ;;  %v2316_v25 = vld [vmem:[%s4133_s7 + $0xd0] sm:$0xff] }
 0x16d   : > { %v709_v38 = vpop.f32.mrf.mxu3  ;;  %1216 = vmatpush.msrb.mxu0 %v2291_v27 }
 0x16e   : > { %2189 = vmatmul.msk.f32.vlgmr.msra.gmra.mxu1 %vm736_vm3, %v709_v38 }
 0x16f   : > { %2275 = vmatpush.msk.msra.mxu1 %vm662_vm1, %v2273_v10  ;;  %1217 = vmatpush.msrb.mxu0 %v2289_v29 }
 0x171   : > { %1117 = vmatpush.msra.mxu1 %v2271_v14  ;;  %1218 = vmatpush.msrb.mxu0 %v2287_v32  ;;  %v2323_v14 = vld [vmem:[%s4133_s7 + $0x108] sm:$0xff]  ;;  %v1310_v32 = vld [vmem:[%s4133_s7 + $0x78] sm:$0xff] }
 0x173   : > { %1118 = vmatpush.msra.mxu1 %v2269_v16  ;;  %1219 = vmatpush.msrb.mxu0 %v2285_v34  ;;  %v2321_v16 = vld [vmem:[%s4133_s7 + $0xf8] sm:$0xff] }
 0x174   : > { %v2346_v34 = vld [vmem:[%s4133_s7 + $0x1b8] sm:$0xff] }
 0x175   : > { %v712_v39 = vpop.f32.mrf.mxu3  ;;  %1119 = vmatpush.msra.mxu1 %v2267_v22  ;;  %1220 = vmatpush.msrb.mxu0 %v2283_v36  ;;  %v1309_v36 = vld [vmem:[%s4133_s7 + $0x70] sm:$0xff] }
 0x176   : > { %2190 = vmatmul.msk.f32.gmra.mxu1 %vm736_vm3, %v712_v39  ;;  %v2253_v39 = vld [vmem:[%s4131_s5 + $0x210] sm:$0xff] }
 0x177   : > { %1120 = vmatpush.msra.mxu1 %v2265_v24  ;;  %1221 = vmatpush.msrb.mxu0 %v2281_v40  ;;  %v2317_v24 = vld [vmem:[%s4133_s7 + $0xd8] sm:$0xff] }
 0x179   : > { %1121 = vmatpush.msra.mxu1 %v2263_v26 }
 0x17b   : > { %1122 = vmatpush.msra.mxu1 %v2261_v28  ;;  %v2315_v28 = vld [vmem:[%s4133_s7 + $0xc8] sm:$0xff] }
 0x17d   : > { %1123 = vmatpush.msra.mxu1 %v2259_v31  ;;  %v2314_v31 = vld [vmem:[%s4133_s7 + $0xc0] sm:$0xff] }
 0x17f   : > { %1124 = vmatpush.msra.mxu1 %v2257_v33  ;;  %v2313_v33 = vld [vmem:[%s4133_s7 + $0xb8] sm:$0xff] }
 0x181   : > { %1125 = vmatpush.msra.mxu1 %v2255_v35 }
 0x183   : > { %1126 = vmatpush.msra.mxu1 %v2253_v39 }
 0x1df   : > { %v760_v30 = vpop.f32.mrf.mxu0 }
 0x1e7   : > { %v763_v41 = vpop.f32.mrf.mxu0 }
 0x1eb   : > { %v783_v37 = vpop.f32.mrf.mxu1 }
 0x1ec   : > { %v784_v38 = vadd.f32 %v783_v37, %v760_v30  ;;  %v2312_v37 = vld [vmem:[%s4133_s7 + $0xb0] sm:$0xff] }
 0x1ee   : > { %790 = vst.msk [vmem:[#allocation2] sm:$0xff] %vm789_vm4, %v784_v38  ;;  %v2345_v38 = vld [vmem:[%s4133_s7 + $0x1b0] sm:$0xff] }
 0x1f3   : > { %v786_v42 = vpop.f32.mrf.mxu1 }
 0x1f4   : > { %v787_v43 = vadd.f32 %v786_v42, %v763_v41 }
 0x1f5   : > { %v793_v46 = vld [vmem:[#allocation2] sm:$0xff] }
 0x1f6   : > { %792 = vst.msk [vmem:[#allocation2 + $0x8] sm:$0x3f] %vm791_vm5, %v787_v43  ;;  %2192 = vmatmul.msk.f32.vlgmr.msra.gmra.mxu3 %vm789_vm4, %v793_v46  ;;  %2195 = vmatmul.msk.f32.vlgmr.msrb.gmra.mxu2 %vm789_vm4, %v793_v46  ;;  %v2311_v46 = vld [vmem:[%s4133_s7 + $0xa8] sm:$0xff] }
 0x1f7   : > { %2278 = vmatpush.msk.msra.mxu3 %vm662_vm1, %v2274_v44  ;;  %2306 = vmatpush.msk.msrb.mxu2 %vm662_vm1, %v2302_v45  ;;  %v3400_v44 = vld [vmem:[%s4132_s6] sm:$0x3]  ;;  %v1308_v45 = vld [vmem:[%s4133_s7 + $0x68] sm:$0xff] }
 0x1f9   : > { %1140 = vmatpush.msra.mxu3 %v2272_v47  ;;  %1235 = vmatpush.msrb.mxu2 %v2300_v48  ;;  %v2344_v48 = vld [vmem:[%s4133_s7 + $0x1a8] sm:$0xff] }
 0x1fb   : > { %1141 = vmatpush.msra.mxu3 %v2270_v49  ;;  %1236 = vmatpush.msrb.mxu2 %v2298_v50  ;;  %v1307_v50 = vld [vmem:[%s4133_s7 + $0x60] sm:$0xff] }
 0x1fd   : > { %v794_v55 = vld [vmem:[#allocation2 + $0x8] sm:$0x3]  ;;  %1142 = vmatpush.msra.mxu3 %v2268_v51  ;;  %1237 = vmatpush.msrb.mxu2 %v2296_v52  ;;  %v980_v1 = vld [vmem:[#allocation2 + $0xa] sm:$0x3]  ;;  %v1170_v11 = vld [vmem:[#allocation2 + $0xc] sm:$0x3] }
 0x1fe   : > { %v884_v56 = vld [vmem:[#allocation2 + $0x1] sm:$0xff]  ;;  %2193 = vmatmul.msk.f32.gmra.mxu3 %vm789_vm4, %v794_v55  ;;  %2196 = vmatmul.msk.f32.gmra.mxu2 %vm789_vm4, %v794_v55  ;;  %v885_v0 = vld [vmem:[#allocation2 + $0x9] sm:$0x3]  ;;  %v1075_v10 = vld [vmem:[#allocation2 + $0xb] sm:$0x3] }
 0x1ff   : > { %v979_v57 = vld [vmem:[#allocation2 + $0x2] sm:$0xff]  ;;  %2220 = vmatmul.msk.f32.vlgmr.msrb.gmra.mxu1 %vm789_vm4, %v884_v56  ;;  %1143 = vmatpush.msra.mxu3 %v2266_v53  ;;  %v2388_v55 = vld [vmem:[%s4133_s7 + $0x2f8] sm:$0xff] }
 0x200   : > { %2248 = vmatmul.msk.f32.vlgmr.msra.gmra.mxu0 %vm789_vm4, %v979_v57  ;;  %1238 = vmatpush.msrb.mxu2 %v2294_v54  ;;  %v1074_v8 = vld [vmem:[#allocation2 + $0x3] sm:$0xff]  ;;  %v1266_v54 = vperm.slane %v3400_v44, 0 }
 0x201   : > { %1144 = vmatpush.msra.mxu3 %v2264_v58  ;;  %v1169_v9 = vld [vmem:[#allocation2 + $0x4] sm:$0xff]  ;;  %1393 = vmatpush.msra.mxu0 %v2325_v12  ;;  %v2342_v58 = vld [vmem:[%s4133_s7 + $0x198] sm:$0xff] }
 0x202   : > { %1239 = vmatpush.msrb.mxu2 %v2292_v59  ;;  %1321 = vmatpush.msrb.mxu1 %v1310_v32  ;;  %v2310_v51 = vld [vmem:[%s4133_s7 + $0xa0] sm:$0xff] }
 0x203   : > { %1145 = vmatpush.msra.mxu3 %v2262_v60  ;;  %1394 = vmatpush.msra.mxu0 %v2324_v13  ;;  %v2343_v52 = vld [vmem:[%s4133_s7 + $0x1a0] sm:$0xff]  ;;  %v2387_v60 = vld [vmem:[%s4133_s7 + $0x2f0] sm:$0xff] }
 0x204   : > { %1240 = vmatpush.msrb.mxu2 %v2290_v61  ;;  %1322 = vmatpush.msrb.mxu1 %v1309_v36  ;;  %v1305_v61 = vld [vmem:[%s4133_s7 + $0x50] sm:$0xff]  ;;  %v1303_v12 = vld [vmem:[%s4133_s7 + $0x40] sm:$0xff] }
 0x205   : > { %1146 = vmatpush.msra.mxu3 %v2260_v62  ;;  %1395 = vmatpush.msra.mxu0 %v2323_v14  ;;  %v2341_v62 = vld [vmem:[%s4133_s7 + $0x190] sm:$0xff]  ;;  %v2339_v13 = vld [vmem:[%s4133_s7 + $0x180] sm:$0xff] }
 0x206   : > { %2223 = vmatmul.msk.f32.vlgmr.msrb.gmra.mxu3 %vm789_vm4, %v884_v56  ;;  %2251 = vmatmul.msk.f32.vlgmr.msra.gmra.mxu2 %vm789_vm4, %v979_v57  ;;  %v1306_v57 = vld [vmem:[%s4133_s7 + $0x58] sm:$0xff]  ;;  %v2335_v32 = vld [vmem:[%s4133_s7 + $0x160] sm:$0xff] }
 0x207   : > { %2221 = vmatmul.msk.f32.gmra.mxu1 %vm789_vm4, %v885_v0  ;;  %1241 = vmatpush.msrb.mxu2 %v2288_v63 }
 0x208   : > { %2249 = vmatmul.msk.f32.gmra.mxu0 %vm789_vm4, %v980_v1  ;;  %1147 = vmatpush.msra.mxu3 %v2258_v2 }
 0x209   : > { %1242 = vmatpush.msrb.mxu2 %v2286_v3  ;;  %1396 = vmatpush.msra.mxu0 %v2322_v15  ;;  %v2386_v3 = vld [vmem:[%s4133_s7 + $0x2e8] sm:$0xff]  ;;  %v2384_v15 = vld [vmem:[%s4133_s7 + $0x2d8] sm:$0xff] }
 0x20a   : > { %1148 = vmatpush.msra.mxu3 %v2256_v4  ;;  %1323 = vmatpush.msrb.mxu1 %v1308_v45  ;;  %v2329_v45 = vld [vmem:[%s4133_s7 + $0x138] sm:$0xff] }
 0x20b   : > { %1243 = vmatpush.msrb.mxu2 %v2284_v5  ;;  %1397 = vmatpush.msra.mxu0 %v2321_v16  ;;  %v1304_v5 = vld [vmem:[%s4133_s7 + $0x48] sm:$0xff]  ;;  %v1302_v16 = vld [vmem:[%s4133_s7 + $0x38] sm:$0xff] }
 0x20c   : > { %1149 = vmatpush.msra.mxu3 %v2254_v6  ;;  %1324 = vmatpush.msrb.mxu1 %v1307_v50  ;;  %v2340_v6 = vld [vmem:[%s4133_s7 + $0x188] sm:$0xff] }
 0x20d   : > { %1244 = vmatpush.msrb.mxu2 %v2282_v7  ;;  %1398 = vmatpush.msra.mxu0 %v2320_v17  ;;  %v2338_v17 = vld [vmem:[%s4133_s7 + $0x178] sm:$0xff]  ;;  %v2332_v50 = vld [vmem:[%s4133_s7 + $0x148] sm:$0xff] }
 0x20e   : > { %2224 = vmatmul.msk.f32.gmra.mxu3 %vm789_vm4, %v885_v0  ;;  %2252 = vmatmul.msk.f32.gmra.mxu2 %vm789_vm4, %v980_v1 }
 0x20f   : > { %2276 = vmatmul.msk.f32.vlgmr.msra.gmra.mxu1 %vm789_vm4, %v1074_v8  ;;  %1399 = vmatpush.msra.mxu0 %v2319_v20  ;;  %v2337_v20 = vld [vmem:[%s4133_s7 + $0x170] sm:$0xff] }
 0x210   : > { %2304 = vmatmul.msk.f32.vlgmr.msrb.gmra.mxu0 %vm789_vm4, %v1169_v9  ;;  %1465 = vmatpush.msrb.mxu3 %v2346_v34 }
 0x211   : > { %1400 = vmatpush.msra.mxu0 %v2318_v23  ;;  %1325 = vmatpush.msrb.mxu1 %v1306_v57  ;;  %v2336_v23 = vld [vmem:[%s4133_s7 + $0x168] sm:$0xff] }
 0x212   : > { %1466 = vmatpush.msrb.mxu3 %v2345_v38  ;;  %1425 = vmatpush.msra.mxu2 %v2329_v45 }
 0x213   : > { %1401 = vmatpush.msra.mxu0 %v2317_v24  ;;  %1326 = vmatpush.msrb.mxu1 %v1305_v61 }
 0x214   : > { %1467 = vmatpush.msrb.mxu3 %v2344_v48  ;;  %v1296_v48 = vld [vmem:[%s4133_s7 + $0x8] sm:$0xff] }
 0x215   : > { %1402 = vmatpush.msra.mxu0 %v2316_v25  ;;  %1327 = vmatpush.msrb.mxu1 %v1304_v5  ;;  %v2412_v5 = vld [vmem:[%s4133_s7 + $0x3b0] sm:$0xff] }
 0x216   : > { %2279 = vmatmul.msk.f32.vlgmr.msra.gmra.mxu3 %vm789_vm4, %v1074_v8  ;;  %2307 = vmatmul.msk.f32.vlgmr.msrb.gmra.mxu2 %vm789_vm4, %v1169_v9  ;;  %v2385_v9 = vld [vmem:[%s4133_s7 + $0x2e0] sm:$0xff] }
 0x217   : > { %2277 = vmatmul.msk.f32.gmra.mxu1 %vm789_vm4, %v1075_v10  ;;  %1403 = vmatpush.msra.mxu0 %v2315_v28  ;;  %v2381_v28 = vld [vmem:[%s4133_s7 + $0x2c0] sm:$0xff] }
 0x218   : > { %2305 = vmatmul.msk.f32.gmra.mxu0 %vm789_vm4, %v1170_v11  ;;  %1468 = vmatpush.msrb.mxu3 %v2343_v52  ;;  %v1295_v52 = vld [vmem:[%s4133_s7] sm:$0xff] }
 0x219   : > { %1404 = vmatpush.msra.mxu0 %v2314_v31  ;;  %1328 = vmatpush.msrb.mxu1 %v1303_v12  ;;  %v1299_v31 = vld [vmem:[%s4133_s7 + $0x20] sm:$0xff]  ;;  %v2411_v12 = vld [vmem:[%s4133_s7 + $0x3a8] sm:$0xff] }
 0x21a   : > { %1469 = vmatpush.msrb.mxu3 %v2342_v58 }
 0x21b   : > { %1405 = vmatpush.msra.mxu0 %v2313_v33  ;;  %1329 = vmatpush.msrb.mxu1 %v1302_v16  ;;  %v2410_v16 = vld [vmem:[%s4133_s7 + $0x3a0] sm:$0xff] }
 0x21c   : > { %1470 = vmatpush.msrb.mxu3 %v2341_v62  ;;  %v2413_v62 = vld [vmem:[%s4133_s7 + $0x3b8] sm:$0xff] }
 0x21d   : > { %1406 = vmatpush.msra.mxu0 %v2312_v37 }
 0x21e   : > { %2280 = vmatmul.msk.f32.gmra.mxu3 %vm789_vm4, %v1075_v10  ;;  %2308 = vmatmul.msk.f32.gmra.mxu2 %vm789_vm4, %v1170_v11 }
 0x21f   : > { %1407 = vmatpush.msra.mxu0 %v2311_v46  ;;  %1471 = vmatpush.msrb.mxu3 %v2340_v6  ;;  %v2333_v46 = vld [vmem:[%s4133_s7 + $0x150] sm:$0xff] }
 0x221   : > { %1408 = vmatpush.msra.mxu0 %v2310_v51  ;;  %1472 = vmatpush.msrb.mxu3 %v2339_v13  ;;  %v2377_v51 = vld [vmem:[%s4133_s7 + $0x2a0] sm:$0xff] }
 0x222   : > { %v1311_v13 = vld [vmem:[%s4133_s7 + $0x80] sm:$0xff] }
 0x223   : > { %1609 = vmatpush.msrb.mxu0 %v2388_v55  ;;  %1473 = vmatpush.msrb.mxu3 %v2338_v17  ;;  %v2331_v55 = vld [vmem:[%s4133_s7 + $0x140] sm:$0xff] }
 0x225   : > { %1610 = vmatpush.msrb.mxu0 %v2387_v60  ;;  %1474 = vmatpush.msrb.mxu3 %v2337_v20  ;;  %v2376_v60 = vld [vmem:[%s4133_s7 + $0x298] sm:$0xff] }
 0x227   : > { %1611 = vmatpush.msrb.mxu0 %v2386_v3  ;;  %1475 = vmatpush.msrb.mxu3 %v2336_v23 }
 0x229   : > { %1612 = vmatpush.msrb.mxu0 %v2385_v9  ;;  %1476 = vmatpush.msrb.mxu3 %v2335_v32  ;;  %v2349_v9 = vld [vmem:[%s4133_s7 + $0x1d0] sm:$0xff] }
 0x22b   : > { %1613 = vmatpush.msrb.mxu0 %v2384_v15  ;;  %v2373_v15 = vld [vmem:[%s4133_s7 + $0x280] sm:$0xff] }
 0x279   : > { %v846_v18 = vpop.f32.mrf.mxu3  ;;  %v869_v19 = vpop.f32.mrf.mxu2 }
 0x27a   : > { %876 = vst.msk [vmem:[#allocation3 + $0x8] sm:$0xff] %vm492_vm0, %v869_v19  ;;  %v1301_v19 = vld [vmem:[%s4133_s7 + $0x30] sm:$0xff] }
 0x27b   : > { %1330 = vmatpush.msrb.mxu1 %v1301_v19  ;;  %v1267_v19 = vperm.slane %v3400_v44, 1 }
 0x27c   : > { %v938_v21 = vpop.f32.mrf.mxu1 }
 0x27d   : > { %v1033_v22 = vpop.f32.mrf.mxu0  ;;  %v967_v35 = vadd.f32 %v938_v21, %v846_v18  ;;  %v2383_v18 = vld [vmem:[%s4133_s7 + $0x2d0] sm:$0xff]  ;;  %v2382_v21 = vld [vmem:[%s4133_s7 + $0x2c8] sm:$0xff] }
 0x27e   : > { %1614 = vmatpush.msrb.mxu0 %v2383_v18 }
 0x27f   : > { %v1062_v47 = vadd.f32 %v1033_v22, %v967_v35  ;;  %v1300_v22 = vld [vmem:[%s4133_s7 + $0x28] sm:$0xff]  ;;  %v2380_v35 = vld [vmem:[%s4133_s7 + $0x2b8] sm:$0xff] }
 0x280   : > { %1615 = vmatpush.msrb.mxu0 %v2382_v21  ;;  %1331 = vmatpush.msrb.mxu1 %v1300_v22  ;;  %v2347_v21 = vld [vmem:[%s4133_s7 + $0x1c0] sm:$0xff] }
 0x281   : > { %v849_v26 = vpop.f32.mrf.mxu3  ;;  %v872_v27 = vpop.f32.mrf.mxu2  ;;  %v881_v40 = vld [vmem:[#allocation3 + $0x8] sm:$0xff] }
 0x282   : > { %877 = vst [vmem:[#allocation3 + $0x10] sm:$0x3] %v849_v26  ;;  %1616 = vmatpush.msrb.mxu0 %v2381_v28  ;;  %1332 = vmatpush.msrb.mxu1 %v1299_v31 }
 0x283   : > { %879 = vst.msk [vmem:[#allocation3 + $0x18] sm:$0x3] %vm878_vm6, %v872_v27 }
 0x284   : > { %v941_v29 = vpop.f32.mrf.mxu1  ;;  %1617 = vmatpush.msrb.mxu0 %v2380_v35 }
 0x285   : > { %v3374_v30 = vpop.f32.mrf.mxu0 }
 0x289   : > { %v882_v39 = vld [vmem:[#allocation3 + $0x10] sm:$0x3]  ;;  %v961_v41 = vpop.f32.mrf.mxu3  ;;  %v1056_v63 = vpop.f32.mrf.mxu2 }
 0x28a   : > { %v969_v42 = vadd.f32 %v941_v29, %v882_v39  ;;  %v968_v43 = vadd.f32 %v961_v41, %v881_v40  ;;  %v883_v1 = vld [vmem:[#allocation3 + $0x18] sm:$0x3]  ;;  %v1298_v39 = vld [vmem:[%s4133_s7 + $0x18] sm:$0xff] }
 0x28b   : > { %v2334_v40 = vld [vmem:[%s4133_s7 + $0x158] sm:$0xff]  ;;  %1333 = vmatpush.msrb.mxu1 %v1298_v39 }
 0x28c   : > { %973 = vst [vmem:[#allocation3 + $0x10] sm:$0x3] %v969_v42  ;;  %v1128_v49 = vpop.f32.mrf.mxu1  ;;  %v2379_v42 = vld [vmem:[%s4133_s7 + $0x2b0] sm:$0xff]  ;;  %1477 = vmatpush.msrb.mxu3 %v2334_v40 }
 0x28d   : > { %972 = vst.msk [vmem:[#allocation3 + $0x8] sm:$0xff] %vm492_vm0, %v968_v43  ;;  %v1157_v53 = vadd.f32 %v1128_v49, %v1062_v47  ;;  %v1223_v56 = vpop.f32.mrf.mxu0  ;;  %1618 = vmatpush.msrb.mxu0 %v2379_v42  ;;  %v1297_v43 = vld [vmem:[%s4133_s7 + $0x10] sm:$0xff]  ;;  %v2378_v47 = vld [vmem:[%s4133_s7 + $0x2a8] sm:$0xff] }
 0x28e   : > { %1334 = vmatpush.msrb.mxu1 %v1297_v43  ;;  %1478 = vmatpush.msrb.mxu3 %v2333_v46  ;;  %v2328_v49 = vld [vmem:[%s4133_s7 + $0x130] sm:$0xff]  ;;  %v2367_v43 = vld [vmem:[%s4133_s7 + $0x258] sm:$0xff] }
 0x28f   : > { %v1252_v59 = vadd.f32 %v1223_v56, %v1157_v53  ;;  %1619 = vmatpush.msrb.mxu0 %v2378_v47  ;;  %1426 = vmatpush.msra.mxu2 %v2328_v49  ;;  %v2327_v53 = vld [vmem:[%s4133_s7 + $0x128] sm:$0xff]  ;;  %v2451_v46 = vld [vmem:[%s4133_s7 + $0x4d8] sm:$0xff]  ;;  %v2366_v49 = vld [vmem:[%s4133_s7 + $0x250] sm:$0xff] }
 0x290   : > { %1335 = vmatpush.msrb.mxu1 %v1296_v48  ;;  %1479 = vmatpush.msrb.mxu3 %v2332_v50  ;;  %v2430_v48 = vld [vmem:[%s4133_s7 + $0x438] sm:$0xff] }
 0x291   : > { %v1270_v0 = vadd.f32 %v1266_v54, %v1252_v59  ;;  %v964_v2 = vpop.f32.mrf.mxu3  ;;  %v1059_v26 = vpop.f32.mrf.mxu2  ;;  %1620 = vmatpush.msrb.mxu0 %v2377_v51  ;;  %1427 = vmatpush.msra.mxu2 %v2327_v53  ;;  %v1314_v59 = vld [vmem:[%s4133_s7 + $0x98] sm:$0xff]  ;;  %v2450_v51 = vld [vmem:[%s4133_s7 + $0x4d0] sm:$0xff]  ;;  %v2365_v53 = vld [vmem:[%s4133_s7 + $0x248] sm:$0xff] }
 0x292   : > { %v970_v4 = vadd.f32 %v964_v2, %v883_v1  ;;  %1336 = vmatpush.msrb.mxu1 %v1295_v52  ;;  %1480 = vmatpush.msrb.mxu3 %v2331_v55  ;;  %v2350_v1 = vld [vmem:[%s4133_s7 + $0x1d8] sm:$0xff]  ;;  %v2375_v2 = vld [vmem:[%s4133_s7 + $0x290] sm:$0xff] }
 0x293   : > { %v977_v7 = vld [vmem:[#allocation3 + $0x10] sm:$0x3]  ;;  %v1274_v8 = vmul.f32 0.5, %v1270_v0  ;;  %1621 = vmatpush.msrb.mxu0 %v2376_v60  ;;  %v1313_v0 = vld [vmem:[%s4133_s7 + $0x90] sm:$0xff]  ;;  %v2371_v50 = vld [vmem:[%s4133_s7 + $0x278] sm:$0xff] }
 0x294   : > { %v1064_v10 = vadd.f32 %v3374_v30, %v977_v7  ;;  %v976_v11 = vld [vmem:[#allocation3 + $0x8] sm:$0xff]  ;;  %974 = vst.msk [vmem:[#allocation3 + $0x18] sm:$0x3] %vm878_vm6, %v970_v4  ;;  %v1131_v34 = vpop.f32.mrf.mxu1  ;;  %1353 = vmatpush.msra.mxu1 %v1314_v59  ;;  %1713 = vmatpush.msra.mxu3 %v2413_v62  ;;  %v2429_v52 = vld [vmem:[%s4133_s7 + $0x430] sm:$0xff]  ;;  %v2369_v59 = vld [vmem:[%s4133_s7 + $0x268] sm:$0xff] }
 0x295   : > { %v1063_v14 = vadd.f32 %v1056_v63, %v976_v11  ;;  %2560 = vtanh.f32 %v1274_v8  ;;  %v2326_v63 = vld [vmem:[%s4133_s7 + $0x120] sm:$0xff]  ;;  %v1226_v4 = vpop.f32.mrf.mxu0  ;;  %1622 = vmatpush.msrb.mxu0 %v2375_v2  ;;  %v1312_v8 = vld [vmem:[%s4133_s7 + $0x88] sm:$0xff]  ;;  %v2370_v55 = vld [vmem:[%s4133_s7 + $0x270] sm:$0xff] }
 0x296   : > { %1068 = vst [vmem:[#allocation3 + $0x10] sm:$0x3] %v1064_v10  ;;  %1428 = vmatpush.msra.mxu2 %v2326_v63  ;;  %1354 = vmatpush.msra.mxu1 %v1313_v0  ;;  %v2374_v11 = vld [vmem:[%s4133_s7 + $0x288] sm:$0xff]  ;;  %v2448_v60 = vld [vmem:[%s4133_s7 + $0x4c0] sm:$0xff]  ;;  %v2363_v0 = vld [vmem:[%s4133_s7 + $0x238] sm:$0xff] }
 0x297   : > { %1067 = vst.msk [vmem:[#allocation3 + $0x8] sm:$0xff] %vm492_vm0, %v1063_v14  ;;  %1714 = vmatpush.msra.mxu3 %v2412_v5  ;;  %1623 = vmatpush.msrb.mxu0 %v2374_v11  ;;  %v2348_v14 = vld [vmem:[%s4133_s7 + $0x1c8] sm:$0xff]  ;;  %v2447_v5 = vld [vmem:[%s4133_s7 + $0x4b8] sm:$0xff]  ;;  %v2425_v11 = vld [vmem:[%s4133_s7 + $0x410] sm:$0xff] }
 0x298   : > { %1497 = vmatpush.msrb.mxu2 %v2350_v1  ;;  %1355 = vmatpush.msra.mxu1 %v1312_v8  ;;  %v2392_v8 = vld [vmem:[%s4133_s7 + $0x318] sm:$0xff] }
 0x299   : > { %v1151_v27 = vpop.f32.mrf.mxu3  ;;  %v1246_v56 = vpop.f32.mrf.mxu2  ;;  %1715 = vmatpush.msra.mxu3 %v2411_v12  ;;  %1624 = vmatpush.msrb.mxu0 %v2373_v15  ;;  %v2391_v12 = vld [vmem:[%s4133_s7 + $0x310] sm:$0xff]  ;;  %v2424_v15 = vld [vmem:[%s4133_s7 + $0x408] sm:$0xff] }
 0x29a   : > { %1498 = vmatpush.msrb.mxu2 %v2349_v9  ;;  %1356 = vmatpush.msra.mxu1 %v1311_v13  ;;  %v2362_v9 = vld [vmem:[%s4133_s7 + $0x230] sm:$0xff]  ;;  %v2361_v13 = vld [vmem:[%s4133_s7 + $0x228] sm:$0xff] }
 0x29b   : > { %v2561_v24 = vpop.eup %2560  ;;  %v978_v25 = vld [vmem:[#allocation3 + $0x18] sm:$0x3]  ;;  %1716 = vmatpush.msra.mxu3 %v2410_v16 }
 0x29c   : > { %v1282_v29 = vmul.f32 0.5, %v2561_v24  ;;  %v1065_v30 = vadd.f32 %v1059_v26, %v978_v25  ;;  %1499 = vmatpush.msrb.mxu2 %v2348_v14  ;;  %v2445_v14 = vld [vmem:[%s4133_s7 + $0x4a8] sm:$0xff] }
 0x29d   : > { %v1072_v33 = vld [vmem:[#allocation3 + $0x10] sm:$0x3]  ;;  %v2390_v16 = vld [vmem:[%s4133_s7 + $0x308] sm:$0xff] }
 0x29e   : > { %v1286_v36 = vadd.f32 0.5, %v1282_v29  ;;  %1069 = vst.msk [vmem:[#allocation3 + $0x18] sm:$0x3] %vm878_vm6, %v1065_v30  ;;  %v1159_v37 = vadd.f32 %v1131_v34, %v1072_v33  ;;  %v1071_v38 = vld [vmem:[#allocation3 + $0x8] sm:$0xff]  ;;  %1500 = vmatpush.msrb.mxu2 %v2347_v21  ;;  %v2389_v21 = vld [vmem:[%s4133_s7 + $0x300] sm:$0xff] }
 0x29f   : > { %v1158_v41 = vadd.f32 %v1151_v27, %v1071_v38 }
 0x2a0   : > { %1290 = vst [vmem:[#allocation3] sm:$0xff] %v1286_v36 }
 0x2a1   : > { %1163 = vst [vmem:[#allocation3 + $0x10] sm:$0x3] %v1159_v37  ;;  %v1154_v58 = vpop.f32.mrf.mxu3  ;;  %v1249_v18 = vpop.f32.mrf.mxu2 }
 0x2a2   : > { %1162 = vst.msk [vmem:[#allocation3 + $0x8] sm:$0xff] %vm492_vm0, %v1158_v41 }
 0x2a5   : > { %v1073_v57 = vld [vmem:[#allocation3 + $0x18] sm:$0x3] }
 0x2a6   : > { %v1160_v61 = vadd.f32 %v1154_v58, %v1073_v57  ;;  %v2428_v57 = vld [vmem:[%s4133_s7 + $0x428] sm:$0xff]  ;;  %v2364_v58 = vld [vmem:[%s4133_s7 + $0x240] sm:$0xff] }
 0x2a8   : > { %v1167_v3 = vld [vmem:[#allocation3 + $0x10] sm:$0x3]  ;;  %1164 = vst.msk [vmem:[#allocation3 + $0x18] sm:$0x3] %vm878_vm6, %v1160_v61 }
 0x2a9   : > { %v1254_v6 = vadd.f32 %v1226_v4, %v1167_v3  ;;  %v1166_v7 = vld [vmem:[#allocation3 + $0x8] sm:$0xff]  ;;  %v2427_v61 = vld [vmem:[%s4133_s7 + $0x420] sm:$0xff] }
 0x2aa   : > { %v1253_v10 = vadd.f32 %v1246_v56, %v1166_v7  ;;  %v2449_v56 = vld [vmem:[%s4133_s7 + $0x4c8] sm:$0xff]  ;;  %v2368_v3 = vld [vmem:[%s4133_s7 + $0x260] sm:$0xff]  ;;  %v2426_v7 = vld [vmem:[%s4133_s7 + $0x418] sm:$0xff] }
 0x2ab   : > { %1258 = vst [vmem:[#allocation3 + $0x10] sm:$0x3] %v1254_v6 }
 0x2ac   : > { %1257 = vst.msk [vmem:[#allocation3 + $0x8] sm:$0xff] %vm492_vm0, %v1253_v10  ;;  %v2446_v10 = vld [vmem:[%s4133_s7 + $0x4b0] sm:$0xff] }
 0x2af   : > { %v1168_v17 = vld [vmem:[#allocation3 + $0x18] sm:$0x3] }
 0x2b0   : > { %v1255_v20 = vadd.f32 %v1249_v18, %v1168_v17  ;;  %v2360_v17 = vld [vmem:[%s4133_s7 + $0x220] sm:$0xff] }
 0x2b1   : > { %v2444_v18 = vld [vmem:[%s4133_s7 + $0x4a0] sm:$0xff] }
 0x2b2   : > { %v1262_v22 = vld [vmem:[#allocation3 + $0x10] sm:$0x3]  ;;  %1259 = vst.msk [vmem:[#allocation3 + $0x18] sm:$0x3] %vm878_vm6, %v1255_v20 }
 0x2b3   : > { %v1272_v23 = vadd.f32 %v1266_v54, %v1262_v22  ;;  %v1261_v24 = vld [vmem:[#allocation3 + $0x8] sm:$0xff]  ;;  %v2423_v20 = vld [vmem:[%s4133_s7 + $0x400] sm:$0xff] }
 0x2b4   : > { %v1271_v25 = vadd.f32 %v1267_v19, %v1261_v24  ;;  %v2359_v22 = vld [vmem:[%s4133_s7 + $0x218] sm:$0xff] }
 0x2b5   : > { %v1276_v26 = vmul.f32 0.5, %v1272_v23  ;;  %v2409_v24 = vld [vmem:[%s4133_s7 + $0x398] sm:$0xff] }
 0x2b6   : > { %v1275_v27 = vmul.f32 0.5, %v1271_v25  ;;  %v2422_v25 = vld [vmem:[%s4133_s7 + $0x3f8] sm:$0xff] }
 0x2b7   : > { %2562 = vtanh.f32 %v1276_v26  ;;  %v2443_v26 = vld [vmem:[%s4133_s7 + $0x498] sm:$0xff] }
 0x2b8   : > { %2564 = vtanh.f32 %v1275_v27  ;;  %v2358_v27 = vld [vmem:[%s4133_s7 + $0x210] sm:$0xff] }
 0x2b9   : > { %v1263_v28 = vld [vmem:[#allocation3 + $0x18] sm:$0x3] }
 0x2ba   : > { %v1273_v29 = vadd.f32 %v1267_v19, %v1263_v28  ;;  %v2408_v28 = vld [vmem:[%s4133_s7 + $0x390] sm:$0xff] }
 0x2bc   : > { %v1277_v30 = vmul.f32 0.5, %v1273_v29  ;;  %v2421_v29 = vld [vmem:[%s4133_s7 + $0x3f0] sm:$0xff] }
 0x2bd   : > { %v2563_v31 = vpop.eup %2562 }
 0x2be   : > { %v2565_v32 = vpop.eup %2564  ;;  %v1284_v33 = vmul.f32 0.5, %v2563_v31  ;;  %2566 = vtanh.f32 %v1277_v30  ;;  %v2442_v30 = vld [vmem:[%s4133_s7 + $0x490] sm:$0xff]  ;;  %v2357_v31 = vld [vmem:[%s4133_s7 + $0x208] sm:$0xff] }
 0x2bf   : > { %v1283_v34 = vmul.f32 0.5, %v2565_v32  ;;  %v2407_v32 = vld [vmem:[%s4133_s7 + $0x388] sm:$0xff] }
 0x2c0   : > { %v1288_v35 = vadd.f32 0.5, %v1284_v33  ;;  %v2420_v33 = vld [vmem:[%s4133_s7 + $0x3e8] sm:$0xff] }
 0x2c1   : > { %v1287_v36 = vadd.f32 0.5, %v1283_v34  ;;  %v2441_v34 = vld [vmem:[%s4133_s7 + $0x488] sm:$0xff] }
 0x2c2   : > { %1292 = vst [vmem:[#allocation3 + $0x10] sm:$0x3] %v1288_v35  ;;  %v2356_v35 = vld [vmem:[%s4133_s7 + $0x200] sm:$0xff] }
 0x2c3   : > { %1291 = vst.msk [vmem:[#allocation3 + $0x8] sm:$0xff] %vm492_vm0, %v1287_v36  ;;  %v2406_v36 = vld [vmem:[%s4133_s7 + $0x380] sm:$0xff] }
 0x2c4   : > { %v2567_v44 = vpop.eup %2566 }
 0x2c5   : > { %v1285_v54 = vmul.f32 0.5, %v2567_v44  ;;  %v2419_v44 = vld [vmem:[%s4133_s7 + $0x3e0] sm:$0xff] }
 0x2c7   : > { %v1289_v37 = vadd.f32 0.5, %v1285_v54  ;;  %v2440_v54 = vld [vmem:[%s4133_s7 + $0x480] sm:$0xff] }
 0x2c9   : > { %1293 = vst.msk [vmem:[#allocation3 + $0x18] sm:$0x3] %vm878_vm6, %v1289_v37  ;;  %v2355_v37 = vld [vmem:[%s4133_s7 + $0x1f8] sm:$0xff] }
 0x2ca   : > { %v1294_v38 = vld [vmem:[#allocation3] ss:$8 sm:$0x3]  ;;  %v1365_v39 = vld [vmem:[#allocation3 + $0x1] ss:$8 sm:$0x3] }
 0x2cb   : > { %v1316_v40 = vperm.slane %v1294_v38, 0  ;;  %v1388_v41 = vperm.slane %v1365_v39, 0  ;;  %v1389_v42 = vperm.slane %v1365_v39, 1  ;;  %v1437_v45 = vld [vmem:[#allocation3 + $0x2] ss:$8 sm:$0x3] }
 0x2cc   : > { %v1460_v47 = vperm.slane %v1437_v45, 0  ;;  %v3651_v62 = vld [vmem:[#allocation3 + $0x4] ss:$8 sm:$0x3]  ;;  %v1317_v63 = vperm.slane %v1294_v38, 1  ;;  %v1461_v2 = vperm.slane %v1437_v45, 1 }
 0x2cd   : > { %1337 = vmatmul.f32.vlgmr.msrb.gmra.mxu1 %v1316_v40  ;;  %1409 = vmatmul.f32.vlgmr.msra.gmra.mxu0 %v1388_v41  ;;  %v3656_v1 = vld [vmem:[#allocation3 + $0x5] ss:$8 sm:$0x3]  ;;  %v1604_v4 = vperm.slane %v3651_v62, 0  ;;  %v1605_v39 = vperm.slane %v3651_v62, 1 }
 0x2ce   : > { %2330 = vmatmul.msk.f32.vlgmr.msra.gmra.mxu2 %vm492_vm0, %v1389_v42  ;;  %1537 = vmatpush.msrb.mxu1 %v2367_v43  ;;  %v1677_v6 = vperm.slane %v3656_v1, 1  ;;  %v3705_v19 = vld [vmem:[#allocation3 + $0x3] ss:$8 sm:$0x3] }
 0x2cf   : > { %1481 = vmatmul.f32.vlgmr.msrb.gmra.mxu3 %v1460_v47  ;;  %1825 = vmatpush.msra.mxu0 %v2451_v46  ;;  %v1533_v23 = vperm.slane %v3705_v19, 1  ;;  %v2418_v38 = vld [vmem:[%s4133_s7 + $0x3d8] sm:$0xff]  ;;  %v2354_v42 = vld [vmem:[%s4133_s7 + $0x1f0] sm:$0xff]  ;;  %v2353_v47 = vld [vmem:[%s4133_s7 + $0x1e8] sm:$0xff] }
 0x2d0   : > { %1753 = vmatpush.msrb.mxu3 %v2430_v48  ;;  %1538 = vmatpush.msrb.mxu1 %v2366_v49  ;;  %v2405_v40 = vld [vmem:[%s4133_s7 + $0x378] sm:$0xff]  ;;  %v2417_v43 = vld [vmem:[%s4133_s7 + $0x3d0] sm:$0xff]  ;;  %v2416_v48 = vld [vmem:[%s4133_s7 + $0x3c8] sm:$0xff] }
 0x2d1   : > { %1569 = vmatpush.msra.mxu2 %v2371_v50  ;;  %1826 = vmatpush.msra.mxu0 %v2450_v51  ;;  %v2439_v41 = vld [vmem:[%s4133_s7 + $0x478] sm:$0xff]  ;;  %v2404_v45 = vld [vmem:[%s4133_s7 + $0x370] sm:$0xff]  ;;  %v2403_v49 = vld [vmem:[%s4133_s7 + $0x368] sm:$0xff] }
 0x2d2   : > { %1754 = vmatpush.msrb.mxu3 %v2429_v52  ;;  %1539 = vmatpush.msrb.mxu1 %v2365_v53  ;;  %v2438_v46 = vld [vmem:[%s4133_s7 + $0x470] sm:$0xff]  ;;  %v2437_v50 = vld [vmem:[%s4133_s7 + $0x468] sm:$0xff]  ;;  %v2352_v51 = vld [vmem:[%s4133_s7 + $0x1e0] sm:$0xff] }
 0x2d3   : > { %1570 = vmatpush.msra.mxu2 %v2370_v55  ;;  %1827 = vmatpush.msra.mxu0 %v2449_v56  ;;  %v2415_v52 = vld [vmem:[%s4133_s7 + $0x3c0] sm:$0xff]  ;;  %v1725_v53 = vld [vmem:[#allocation3 + $0x6] ss:$8 sm:$0x3] }
 0x2d4   : > { %1755 = vmatpush.msrb.mxu3 %v2428_v57  ;;  %1540 = vmatpush.msrb.mxu1 %v2364_v58  ;;  %v2402_v55 = vld [vmem:[%s4133_s7 + $0x360] sm:$0xff]  ;;  %v3813_v57 = vld [vmem:[#allocation3 + $0x7] ss:$8 sm:$0x3]  ;;  %v1532_v58 = vperm.slane %v3705_v19, 0 }
 0x2d5   : > { %1571 = vmatpush.msra.mxu2 %v2369_v59  ;;  %1828 = vmatpush.msra.mxu0 %v2448_v60  ;;  %v2436_v56 = vld [vmem:[%s4133_s7 + $0x460] sm:$0xff]  ;;  %v1748_v59 = vperm.slane %v1725_v53, 0  ;;  %v2434_v60 = vld [vmem:[%s4133_s7 + $0x458] sm:$0xff] }
 0x2d6   : > { %1756 = vmatpush.msrb.mxu3 %v2427_v61  ;;  %2309 = vmatmul.msk.f32.vlgmr.msra.gmra.mxu1 %vm492_vm0, %v1317_v63  ;;  %v1820_v61 = vperm.slane %v3813_v57, 0  ;;  %v2401_v62 = vld [vmem:[%s4133_s7 + $0x358] sm:$0xff]  ;;  %v2452_v19 = vld [vmem:[%s4133_s7 + $0x4e0] sm:$0xff] }
 0x2d7   : > { %2351 = vmatmul.msk.f32.vlgmr.msrb.gmra.mxu2 %vm492_vm0, %v1461_v2  ;;  %1541 = vmatpush.msrb.mxu1 %v2363_v0  ;;  %v2497_v63 = vld [vmem:[%s4133_s7 + $0x638] sm:$0xff]  ;;  %v2433_v0 = vld [vmem:[%s4133_s7 + $0x450] sm:$0xff] }
 0x2d8   : > { %1572 = vmatpush.msra.mxu2 %v2368_v3  ;;  %1625 = vmatmul.f32.vlgmr.msrb.gmra.mxu0 %v1604_v4  ;;  %v2400_v2 = vld [vmem:[%s4133_s7 + $0x350] sm:$0xff]  ;;  %v2432_v4 = vld [vmem:[%s4133_s7 + $0x448] sm:$0xff] }
 0x2d9   : > { %2414 = vmatmul.msk.f32.vlgmr.msra.gmra.mxu3 %vm492_vm0, %v1677_v6  ;;  %1829 = vmatpush.msra.mxu0 %v2447_v5  ;;  %v2496_v3 = vld [vmem:[%s4133_s7 + $0x630] sm:$0xff]  ;;  %v2399_v5 = vld [vmem:[%s4133_s7 + $0x348] sm:$0xff] }
 0x2da   : > { %1757 = vmatpush.msrb.mxu3 %v2426_v7  ;;  %1641 = vmatpush.msrb.mxu2 %v2392_v8  ;;  %v2495_v6 = vld [vmem:[%s4133_s7 + $0x628] sm:$0xff]  ;;  %v2431_v7 = vld [vmem:[%s4133_s7 + $0x440] sm:$0xff] }
 0x2db   : > { %1542 = vmatpush.msrb.mxu1 %v2362_v9  ;;  %1830 = vmatpush.msra.mxu0 %v2446_v10  ;;  %v2398_v8 = vld [vmem:[%s4133_s7 + $0x340] sm:$0xff]  ;;  %v2455_v9 = vld [vmem:[%s4133_s7 + $0x4f8] sm:$0xff] }
 0x2dc   : > { %1758 = vmatpush.msrb.mxu3 %v2425_v11  ;;  %1642 = vmatpush.msrb.mxu2 %v2391_v12  ;;  %v3853_v10 = vld [vmem:[#allocation3 + $0x11] ss:$8 sm:$0x3]  ;;  %v1749_v12 = vperm.slane %v1725_v53, 1 }
 0x2dd   : > { %1543 = vmatpush.msrb.mxu1 %v2361_v13  ;;  %1831 = vmatpush.msra.mxu0 %v2445_v14  ;;  %v2494_v11 = vld [vmem:[%s4133_s7 + $0x620] sm:$0xff]  ;;  %v2397_v13 = vld [vmem:[%s4133_s7 + $0x338] sm:$0xff]  ;;  %v1965_v14 = vperm.slane %v3853_v10, 1 }
 0x2de   : > { %1759 = vmatpush.msrb.mxu3 %v2424_v15  ;;  %1643 = vmatpush.msrb.mxu2 %v2390_v16  ;;  %v2454_v15 = vld [vmem:[%s4133_s7 + $0x4f0] sm:$0xff]  ;;  %v2457_v53 = vld [vmem:[%s4133_s7 + $0x500] sm:$0xff] }
 0x2df   : > { %1544 = vmatpush.msrb.mxu1 %v2360_v17  ;;  %1832 = vmatpush.msra.mxu0 %v2444_v18  ;;  %v2396_v16 = vld [vmem:[%s4133_s7 + $0x330] sm:$0xff]  ;;  %v2453_v17 = vld [vmem:[%s4133_s7 + $0x4e8] sm:$0xff] }
 0x2e0   : > { %1760 = vmatpush.msrb.mxu3 %v2423_v20  ;;  %1644 = vmatpush.msrb.mxu2 %v2389_v21  ;;  %v2395_v18 = vld [vmem:[%s4133_s7 + $0x328] sm:$0xff]  ;;  %v2472_v20 = vld [vmem:[%s4133_s7 + $0x578] sm:$0xff]  ;;  %v2394_v21 = vld [vmem:[%s4133_s7 + $0x320] sm:$0xff] }
 0x2e1   : > { %1545 = vmatpush.msrb.mxu1 %v2359_v22  ;;  %2372 = vmatmul.msk.f32.vlgmr.msra.gmra.mxu2 %vm492_vm0, %v1533_v23  ;;  %v1821_v22 = vperm.slane %v3813_v57, 1  ;;  %v1676_v23 = vperm.slane %v3656_v1, 0  ;;  %v2475_v1 = vld [vmem:[%s4133_s7 + $0x590] sm:$0xff]  ;;  %v2481_v57 = vld [vmem:[%s4133_s7 + $0x5b8] sm:$0xff] }
 0x2e2   : > { %1681 = vmatpush.msra.mxu2 %v2409_v24  ;;  %1761 = vmatpush.msrb.mxu3 %v2422_v25  ;;  %v2471_v24 = vld [vmem:[%s4133_s7 + $0x570] sm:$0xff]  ;;  %v2476_v25 = vld [vmem:[%s4133_s7 + $0x598] sm:$0xff] }
 0x2e3   : > { %1833 = vmatpush.msra.mxu0 %v2443_v26  ;;  %1546 = vmatpush.msrb.mxu1 %v2358_v27  ;;  %v2470_v26 = vld [vmem:[%s4133_s7 + $0x568] sm:$0xff]  ;;  %v2469_v27 = vld [vmem:[%s4133_s7 + $0x560] sm:$0xff] }
 0x2e4   : > { %1682 = vmatpush.msra.mxu2 %v2408_v28  ;;  %1762 = vmatpush.msrb.mxu3 %v2421_v29  ;;  %v2474_v28 = vld [vmem:[%s4133_s7 + $0x588] sm:$0xff]  ;;  %v2468_v29 = vld [vmem:[%s4133_s7 + $0x558] sm:$0xff] }
 0x2e5   : > { %1834 = vmatpush.msra.mxu0 %v2442_v30  ;;  %1547 = vmatpush.msrb.mxu1 %v2357_v31  ;;  %v2473_v30 = vld [vmem:[%s4133_s7 + $0x580] sm:$0xff] }
 0x2e6   : > { %1683 = vmatpush.msra.mxu2 %v2407_v32  ;;  %1763 = vmatpush.msrb.mxu3 %v2420_v33  ;;  %v1869_v31 = vld [vmem:[#allocation3 + $0x10] ss:$8 sm:$0x3]  ;;  %v2493_v32 = vld [vmem:[%s4133_s7 + $0x618] sm:$0xff]  ;;  %v2467_v33 = vld [vmem:[%s4133_s7 + $0x550] sm:$0xff] }
 0x2e7   : > { %1835 = vmatpush.msra.mxu0 %v2441_v34  ;;  %1548 = vmatpush.msrb.mxu1 %v2356_v35  ;;  %v1893_v34 = vperm.slane %v1869_v31, 1  ;;  %v2492_v35 = vld [vmem:[%s4133_s7 + $0x610] sm:$0xff] }
 0x2e8   : > { %1684 = vmatpush.msra.mxu2 %v2406_v36  ;;  %1764 = vmatpush.msrb.mxu3 %v2419_v44  ;;  %v2466_v36 = vld [vmem:[%s4133_s7 + $0x548] sm:$0xff] }
 0x2e9   : > { %1836 = vmatpush.msra.mxu0 %v2440_v54  ;;  %1549 = vmatpush.msrb.mxu1 %v2355_v37  ;;  %v2491_v44 = vld [vmem:[%s4133_s7 + $0x608] sm:$0xff]  ;;  %v2465_v54 = vld [vmem:[%s4133_s7 + $0x540] sm:$0xff] }
 0x2ea   : > { %2393 = vmatmul.msk.f32.vlgmr.msrb.gmra.mxu2 %vm492_vm0, %v1605_v39  ;;  %1765 = vmatpush.msrb.mxu3 %v2418_v38  ;;  %v2490_v37 = vld [vmem:[%s4133_s7 + $0x600] sm:$0xff]  ;;  %v2464_v38 = vld [vmem:[%s4133_s7 + $0x538] sm:$0xff] }
 0x2eb   : > { %1685 = vmatpush.msra.mxu2 %v2405_v40  ;;  %1837 = vmatpush.msra.mxu0 %v2439_v41  ;;  %v2489_v39 = vld [vmem:[%s4133_s7 + $0x5f8] sm:$0xff]  ;;  %v2463_v40 = vld [vmem:[%s4133_s7 + $0x530] sm:$0xff] }
 0x2ec   : > { %1550 = vmatpush.msrb.mxu1 %v2354_v42  ;;  %1766 = vmatpush.msrb.mxu3 %v2417_v43  ;;  %v2488_v41 = vld [vmem:[%s4133_s7 + $0x5f0] sm:$0xff]  ;;  %v2462_v42 = vld [vmem:[%s4133_s7 + $0x528] sm:$0xff] }
 0x2ed   : > { %1686 = vmatpush.msra.mxu2 %v2404_v45  ;;  %1838 = vmatpush.msra.mxu0 %v2438_v46  ;;  %v2487_v43 = vld [vmem:[%s4133_s7 + $0x5e8] sm:$0xff]  ;;  %v2461_v45 = vld [vmem:[%s4133_s7 + $0x520] sm:$0xff] }
 0x2ee   : > { %1551 = vmatpush.msrb.mxu1 %v2353_v47  ;;  %1767 = vmatpush.msrb.mxu3 %v2416_v48  ;;  %v2486_v46 = vld [vmem:[%s4133_s7 + $0x5e0] sm:$0xff]  ;;  %v2460_v47 = vld [vmem:[%s4133_s7 + $0x518] sm:$0xff] }
 0x2ef   : > { %1687 = vmatpush.msra.mxu2 %v2403_v49  ;;  %1839 = vmatpush.msra.mxu0 %v2437_v50  ;;  %v2485_v48 = vld [vmem:[%s4133_s7 + $0x5d8] sm:$0xff]  ;;  %v2459_v49 = vld [vmem:[%s4133_s7 + $0x510] sm:$0xff] }
 0x2f0   : > { %1552 = vmatpush.msrb.mxu1 %v2352_v51  ;;  %1768 = vmatpush.msrb.mxu3 %v2415_v52  ;;  %v2484_v50 = vld [vmem:[%s4133_s7 + $0x5d0] sm:$0xff]  ;;  %v2458_v51 = vld [vmem:[%s4133_s7 + $0x508] sm:$0xff] }
 0x2f1   : > { %1688 = vmatpush.msra.mxu2 %v2402_v55  ;;  %1840 = vmatpush.msra.mxu0 %v2436_v56  ;;  %v2483_v52 = vld [vmem:[%s4133_s7 + $0x5c8] sm:$0xff]  ;;  %v2482_v55 = vld [vmem:[%s4133_s7 + $0x5c0] sm:$0xff]  ;;  %v1892_v56 = vperm.slane %v1869_v31, 0 }
 0x2f2   : > { %1553 = vmatmul.f32.vlgmr.msrb.gmra.mxu1 %v1532_v58  ;;  %1769 = vmatmul.f32.vlgmr.msrb.gmra.mxu3 %v1748_v59  ;;  %v2480_v58 = vld [vmem:[%s4133_s7 + $0x5b0] sm:$0xff]  ;;  %v2479_v59 = vld [vmem:[%s4133_s7 + $0x5a8] sm:$0xff] }
 0x2f3   : > { %1785 = vmatpush.msra.mxu1 %v2434_v60  ;;  %1841 = vmatmul.f32.vlgmr.msra.gmra.mxu0 %v1820_v61  ;;  %v2478_v60 = vld [vmem:[%s4133_s7 + $0x5a0] sm:$0xff]  ;;  %v1964_v61 = vperm.slane %v3853_v10, 0 }
 0x2f4   : > { %1689 = vmatpush.msra.mxu2 %v2401_v62  ;;  %2001 = vmatpush.msra.mxu3 %v2497_v63 }
 0x2f5   : > { %1786 = vmatpush.msra.mxu1 %v2433_v0 }
 0x2f6   : > { %1690 = vmatpush.msra.mxu2 %v2400_v2  ;;  %2002 = vmatpush.msra.mxu3 %v2496_v3 }
 0x2f7   : > { %1787 = vmatpush.msra.mxu1 %v2432_v4 }
 0x2f8   : > { %1691 = vmatpush.msra.mxu2 %v2399_v5  ;;  %2003 = vmatpush.msra.mxu3 %v2495_v6 }
 0x2f9   : > { %1788 = vmatpush.msra.mxu1 %v2431_v7 }
 0x2fa   : > { %1692 = vmatpush.msra.mxu2 %v2398_v8  ;;  %2004 = vmatpush.msra.mxu3 %v2494_v11 }
 0x2fb   : > { %1857 = vmatpush.msrb.mxu1 %v2455_v9  ;;  %2498 = vmatmul.msk.f32.vlgmr.msra.gmra.mxu3 %vm492_vm0, %v1965_v14 }
 0x2fc   : > { %2435 = vmatmul.msk.f32.vlgmr.msra.gmra.mxu1 %vm492_vm0, %v1749_v12  ;;  %1693 = vmatpush.msra.mxu2 %v2397_v13 }
 0x2fd   : > { %1858 = vmatpush.msrb.mxu1 %v2454_v15 }
 0x2fe   : > { %1694 = vmatpush.msra.mxu2 %v2396_v16 }
 0x2ff   : > { %1859 = vmatpush.msrb.mxu1 %v2453_v17 }
 0x300   : > { %1695 = vmatpush.msra.mxu2 %v2395_v18 }
 0x301   : > { %1860 = vmatpush.msrb.mxu1 %v2452_v19 }
 0x302   : > { %1696 = vmatpush.msra.mxu2 %v2394_v21 }
 0x303   : > { %1897 = vmatpush.msra.mxu1 %v2472_v20  ;;  %1697 = vmatmul.f32.vlgmr.msra.gmra.mxu2 %v1676_v23 }
 0x304   : > { %2456 = vmatmul.msk.f32.vlgmr.msrb.gmra.mxu1 %vm492_vm0, %v1821_v22  ;;  %1929 = vmatpush.msrb.mxu2 %v2476_v25 }
 0x305   : > { %1898 = vmatpush.msra.mxu1 %v2471_v24 }
 0x306   : > { %1930 = vmatpush.msrb.mxu2 %v2475_v1 }
 0x307   : > { %1899 = vmatpush.msra.mxu1 %v2470_v26 }
 0x308   : > { %1931 = vmatpush.msrb.mxu2 %v2474_v28 }
 0x309   : > { %1900 = vmatpush.msra.mxu1 %v2469_v27 }
 0x30a   : > { %1932 = vmatpush.msrb.mxu2 %v2473_v30 }
 0x30b   : > { %1901 = vmatpush.msra.mxu1 %v2468_v29  ;;  %2477 = vmatmul.msk.f32.vlgmr.msrb.gmra.mxu2 %vm492_vm0, %v1893_v34  ;;  %v2032_v29 = vld [vmem:[%s4135_s9 + $0x70] sm:$0xff]  ;;  %v2029_v34 = vld [vmem:[%s4135_s9 + $0x58] sm:$0xff] }
 0x30c   : > { %1969 = vmatpush.msra.mxu2 %v2493_v32  ;;  %2039 = vmatpush.msrb.mxu3 %v2032_v29  ;;  %v2031_v32 = vld [vmem:[%s4135_s9 + $0x68] sm:$0xff] }
 0x30d   : > { %1902 = vmatpush.msra.mxu1 %v2467_v33  ;;  %v2030_v33 = vld [vmem:[%s4135_s9 + $0x60] sm:$0xff] }
 0x30e   : > { %1970 = vmatpush.msra.mxu2 %v2492_v35  ;;  %2040 = vmatpush.msrb.mxu3 %v2031_v32  ;;  %v2028_v35 = vld [vmem:[%s4135_s9 + $0x50] sm:$0xff] }
 0x30f   : > { %1903 = vmatpush.msra.mxu1 %v2466_v36 }
 0x310   : > { %1971 = vmatpush.msra.mxu2 %v2491_v44  ;;  %2041 = vmatpush.msrb.mxu3 %v2030_v33  ;;  %v2027_v44 = vld [vmem:[%s4135_s9 + $0x48] sm:$0xff] }
 0x311   : > { %1904 = vmatpush.msra.mxu1 %v2465_v54 }
 0x312   : > { %1972 = vmatpush.msra.mxu2 %v2490_v37  ;;  %2042 = vmatpush.msrb.mxu3 %v2029_v34 }
 0x313   : > { %1905 = vmatpush.msra.mxu1 %v2464_v38  ;;  %v2026_v38 = vld [vmem:[%s4135_s9 + $0x40] sm:$0xff] }
 0x314   : > { %1973 = vmatpush.msra.mxu2 %v2489_v39  ;;  %2043 = vmatpush.msrb.mxu3 %v2028_v35 }
 0x315   : > { %1906 = vmatpush.msra.mxu1 %v2463_v40 }
 0x316   : > { %1974 = vmatpush.msra.mxu2 %v2488_v41  ;;  %2044 = vmatpush.msrb.mxu3 %v2027_v44  ;;  %v2025_v41 = vld [vmem:[%s4135_s9 + $0x38] sm:$0xff] }
 0x317   : > { %1907 = vmatpush.msra.mxu1 %v2462_v42  ;;  %v2024_v42 = vld [vmem:[%s4135_s9 + $0x30] sm:$0xff] }
 0x318   : > { %1975 = vmatpush.msra.mxu2 %v2487_v43  ;;  %2045 = vmatpush.msrb.mxu3 %v2026_v38  ;;  %v2023_v43 = vld [vmem:[%s4135_s9 + $0x28] sm:$0xff] }
 0x319   : > { %1908 = vmatpush.msra.mxu1 %v2461_v45 }
 0x31a   : > { %1976 = vmatpush.msra.mxu2 %v2486_v46  ;;  %2046 = vmatpush.msrb.mxu3 %v2025_v41  ;;  %v2022_v46 = vld [vmem:[%s4135_s9 + $0x20] sm:$0xff] }
 0x31b   : > { %1909 = vmatpush.msra.mxu1 %v2460_v47 }
 0x31c   : > { %1977 = vmatpush.msra.mxu2 %v2485_v48  ;;  %2047 = vmatpush.msrb.mxu3 %v2024_v42 }
 0x31d   : > { %1910 = vmatpush.msra.mxu1 %v2459_v49  ;;  %v2021_v49 = vld [vmem:[%s4135_s9 + $0x18] sm:$0xff] }
 0x31e   : > { %1978 = vmatpush.msra.mxu2 %v2484_v50  ;;  %2048 = vmatpush.msrb.mxu3 %v2023_v43 }
 0x31f   : > { %1911 = vmatpush.msra.mxu1 %v2458_v51 }
 0x320   : > { %1979 = vmatpush.msra.mxu2 %v2483_v52  ;;  %2049 = vmatpush.msrb.mxu3 %v2022_v46  ;;  %v2020_v52 = vld [vmem:[%s4135_s9 + $0x10] sm:$0xff] }
 0x321   : > { %1912 = vmatpush.msra.mxu1 %v2457_v53  ;;  %v2019_v53 = vld [vmem:[%s4135_s9 + $0x8] sm:$0xff] }
 0x322   : > { %1913 = vmatmul.f32.vlgmr.msra.gmra.mxu1 %v1892_v56  ;;  %1980 = vmatpush.msra.mxu2 %v2482_v55  ;;  %v2072_v55 = vld [vmem:[%s4137_s11 + $0x50] sm:$0xf]  ;;  %v2071_v56 = vld [vmem:[%s4137_s11 + $0x48] sm:$0xff] }
 0x323   : > { %2050 = vmatpush.msrb.mxu3 %v2021_v49  ;;  %2500 = vmatpush.msk.msrb.mxu0 %vm662_vm1, %v2072_v55 }
 0x324   : > { %1981 = vmatpush.msra.mxu2 %v2481_v57  ;;  %v2018_v57 = vld [vmem:[%s4135_s9] sm:$0xff] }
 0x325   : > { %2051 = vmatpush.msrb.mxu3 %v2020_v52  ;;  %2086 = vmatpush.msrb.mxu0 %v2071_v56 }
 0x326   : > { %1982 = vmatpush.msra.mxu2 %v2480_v58  ;;  %v2070_v58 = vld [vmem:[%s4137_s11 + $0x40] sm:$0xff] }
 0x327   : > { %2052 = vmatpush.msrb.mxu3 %v2019_v53  ;;  %2087 = vmatpush.msrb.mxu0 %v2070_v58 }
 0x328   : > { %1983 = vmatpush.msra.mxu2 %v2479_v59 }
 0x329   : > { %2053 = vmatpush.msrb.mxu3 %v2018_v57 }
 0x32a   : > { %1984 = vmatpush.msra.mxu2 %v2478_v60 }
 0x32b   : > { %1985 = vmatmul.f32.vlgmr.msra.gmra.mxu2 %v1964_v61 }
 0x34a   : > { %v1338_v62 = vpop.f32.mrf.mxu1  ;;  %v1410_v3 = vpop.f32.mrf.mxu0 }
 0x351   : > { %v1430_v2 = vpop.f32.mrf.mxu2 }
 0x352   : > { %v1431_v4 = vadd.f32 %v1430_v2, %v1410_v3  ;;  %v1482_v8 = vpop.f32.mrf.mxu3 }
 0x353   : > { %v1358_v63 = vpop.f32.mrf.mxu1 }
 0x354   : > { %v1359_v0 = vadd.f32 %v1358_v63, %v1338_v62 }
 0x355   : > { %v1626_v18 = vpop.f32.mrf.mxu0 }
 0x356   : > { %1362 = vst.msk [vmem:[#allocation4] sm:$0x1] %vm1361_vm7, %v1359_v0  ;;  %v2012_v0 = vld [vmem:[%s4134_s8] sm:$0x1] }
 0x35a   : > { %v1502_v7 = vpop.f32.mrf.mxu2 }
 0x35b   : > { %v1503_v9 = vadd.f32 %v1502_v7, %v1482_v8  ;;  %v2069_v8 = vld [vmem:[%s4137_s11 + $0x38] sm:$0xff] }
 0x35c   : > { %v1718_v22 = vpop.f32.mrf.mxu3  ;;  %2088 = vmatpush.msrb.mxu0 %v2069_v8 }
 0x35d   : > { %v1363_v5 = vld [vmem:[#allocation4] sm:$0x1] }
 0x35e   : > { %v1433_v6 = vadd.f32 %v1431_v4, %v1363_v5 }
 0x360   : > { %1434 = vst.msk [vmem:[#allocation4] sm:$0x1] %vm1361_vm7, %v1433_v6 }
 0x364   : > { %v1574_v12 = vpop.f32.mrf.mxu2 }
 0x367   : > { %v1435_v11 = vld [vmem:[#allocation4] sm:$0x1] }
 0x368   : > { %v1505_v10 = vadd.f32 %v1503_v9, %v1435_v11  ;;  %v2068_v9 = vld [vmem:[%s4137_s11 + $0x30] sm:$0xff]  ;;  %v2067_v11 = vld [vmem:[%s4137_s11 + $0x28] sm:$0xff] }
 0x369   : > { %2089 = vmatpush.msrb.mxu0 %v2068_v9 }
 0x36a   : > { %1506 = vst.msk [vmem:[#allocation4] sm:$0x1] %vm1361_vm7, %v1505_v10  ;;  %v2066_v10 = vld [vmem:[%s4137_s11 + $0x20] sm:$0xff] }
 0x36b   : > { %2090 = vmatpush.msrb.mxu0 %v2067_v11 }
 0x36d   : > { %v1646_v17 = vpop.f32.mrf.mxu2  ;;  %2091 = vmatpush.msrb.mxu0 %v2066_v10 }
 0x36e   : > { %v1647_v19 = vadd.f32 %v1646_v17, %v1626_v18 }
 0x36f   : > { %v1554_v13 = vpop.f32.mrf.mxu1 }
 0x370   : > { %v1575_v14 = vadd.f32 %v1574_v12, %v1554_v13  ;;  %v1842_v54 = vpop.f32.mrf.mxu0  ;;  %v2065_v12 = vld [vmem:[%s4137_s11 + $0x18] sm:$0xff]  ;;  %v2064_v13 = vld [vmem:[%s4137_s11 + $0x10] sm:$0xff] }
 0x371   : > { %v1507_v15 = vld [vmem:[#allocation4] sm:$0x1]  ;;  %2092 = vmatpush.msrb.mxu0 %v2065_v12 }
 0x372   : > { %v1577_v16 = vadd.f32 %v1575_v14, %v1507_v15  ;;  %v2063_v14 = vld [vmem:[%s4137_s11 + $0x8] sm:$0xff]  ;;  %v2062_v15 = vld [vmem:[%s4137_s11] sm:$0xff] }
 0x373   : > { %2093 = vmatpush.msrb.mxu0 %v2064_v13 }
 0x374   : > { %1578 = vst.msk [vmem:[#allocation4] sm:$0x1] %vm1361_vm7, %v1577_v16  ;;  %v2033_v16 = vld [vmem:[%s4136_s10] sm:$0x1] }
 0x375   : > { %v1770_v27 = vpop.f32.mrf.mxu3  ;;  %2094 = vmatpush.msrb.mxu0 %v2063_v14 }
 0x377   : > { %2095 = vmatpush.msrb.mxu0 %v2062_v15 }
 0x379   : > { %v1790_v1 = vpop.f32.mrf.mxu1 }
 0x37a   : > { %v1791_v28 = vadd.f32 %v1790_v1, %v1770_v27 }
 0x37b   : > { %v1579_v20 = vld [vmem:[#allocation4] sm:$0x1] }
 0x37c   : > { %v1649_v21 = vadd.f32 %v1647_v19, %v1579_v20 }
 0x37e   : > { %1650 = vst.msk [vmem:[#allocation4] sm:$0x1] %vm1361_vm7, %v1649_v21  ;;  %v2006_v60 = vpop.f32.mrf.mxu3 }
 0x381   : > { %v1862_v36 = vpop.f32.mrf.mxu1 }
 0x382   : > { %v1863_v37 = vadd.f32 %v1862_v36, %v1842_v54 }
 0x385   : > { %v1651_v23 = vld [vmem:[#allocation4] sm:$0x1] }
 0x386   : > { %v1698_v24 = vpop.f32.mrf.mxu2 }
 0x387   : > { %v1719_v25 = vadd.f32 %v1718_v22, %v1698_v24 }
 0x389   : > { %v1721_v26 = vadd.f32 %v1719_v25, %v1651_v23  ;;  %v2073_v23 = vld [vmem:[%s4138_s12] sm:$0x1] }
 0x38b   : > { %1722 = vst.msk [vmem:[#allocation4] sm:$0x1] %vm1361_vm7, %v1721_v26 }
 0x38e   : > { %v1934_v47 = vpop.f32.mrf.mxu2 }
 0x392   : > { %v1723_v30 = vld [vmem:[#allocation4] sm:$0x1] }
 0x393   : > { %v1793_v31 = vadd.f32 %v1791_v28, %v1723_v30 }
 0x395   : > { %1794 = vst.msk [vmem:[#allocation4] sm:$0x1] %vm1361_vm7, %v1793_v31 }
 0x39c   : > { %v1795_v39 = vld [vmem:[#allocation4] sm:$0x1] }
 0x39d   : > { %v1865_v40 = vadd.f32 %v1863_v37, %v1795_v39 }
 0x39f   : > { %1866 = vst.msk [vmem:[#allocation4] sm:$0x1] %vm1361_vm7, %v1865_v40  ;;  %v1914_v45 = vpop.f32.mrf.mxu1 }
 0x3a0   : > { %v1935_v48 = vadd.f32 %v1934_v47, %v1914_v45 }
 0x3a6   : > { %v1867_v50 = vld [vmem:[#allocation4] sm:$0x1] }
 0x3a7   : > { %v1937_v51 = vadd.f32 %v1935_v48, %v1867_v50 }
 0x3a9   : > { %1938 = vst.msk [vmem:[#allocation4] sm:$0x1] %vm1361_vm7, %v1937_v51 }
 0x3ae   : > { %v1986_v59 = vpop.f32.mrf.mxu2 }
 0x3af   : > { %v2007_v61 = vadd.f32 %v2006_v60, %v1986_v59 }
 0x3b0   : > { %v1939_v62 = vld [vmem:[#allocation4] sm:$0x1] }
 0x3b1   : > { %v2009_v63 = vadd.f32 %v2007_v61, %v1939_v62 }
 0x3b3   : > { %2010 = vst.msk [vmem:[#allocation4] sm:$0x1] %vm1361_vm7, %v2009_v63 }
 0x3ba   : > { %v2011_v2 = vld [vmem:[#allocation4] sm:$0x1] }
 0x3bb   : > { %v2013_v3 = vadd.f32 %v2012_v0, %v2011_v2 }
 0x3bd   : > { %v2014_v4 = vmul.f32 0.5, %v2013_v3 }
 0x3bf   : > { %2568 = vtanh.f32 %v2014_v4 }
 0x3c5   : > { %v2569_v5 = vpop.eup %2568 }
 0x3c6   : > { %v2016_v6 = vmul.f32 0.5, %v2569_v5 }
 0x3c8   : > { %v2017_v7 = vadd.f32 0.5, %v2016_v6 }
 0x3ca   : > { %2499 = vmatmul.msk.f32.vlgmr.msrb.gmra.mxu3 %vm2034_vm8, %v2017_v7 }
 0x44d   : > { %v2055_v17 = vpop.f32.mrf.mxu3 }
 0x44e   : > { %v2056_v18 = vadd.f32 %v2055_v17, %v2033_v16 }
 0x450   : > { %v2058_v19 = vmul.f32 0.5, %v2056_v18 }
 0x452   : > { %2570 = vtanh.f32 %v2058_v19 }
 0x458   : > { %v2571_v20 = vpop.eup %2570 }
 0x459   : > { %v2060_v21 = vmul.f32 0.5, %v2571_v20 }
 0x45b   : > { %v2061_v22 = vadd.f32 0.5, %v2060_v21 }
 0x45d   : > { %2501 = vmatmul.msk.f32.vlgmr.msrb.gmra.mxu0 %vm789_vm4, %v2061_v22 }
 0x4da   : > { %v2097_v24 = vpop.f32.mrf.mxu0 }
 0x4db   : > { %v2098_v25 = vadd.f32 %v2097_v24, %v2073_v23 }
 0x4dd   : > { %2100 = vst [vmem:[%s432_s16] sm:$0x1] %v2098_v25 }
 0x4de   : > { %2599 = shalt.err (!%p2596_p3)
}
 0x4df   : > { %2505 = dma.vmem_to_hbm [thread:$0]  (%p2744_p5), %s2113_s19, 16, %s2115_s24, %s2102_s21  }
 0x4e0 PF: > { %p2511_p4 = scmp.ge.s32.totalorder %s2634_s28, 2  ;;  %s2126_s27 = sand.u32 1, %s2622_s25  }
 0x4e1   : > { %s2127_s16 = scalar_lea.sflag [#allocation6], %s2126_s27 }
 0x4e2   : > { %p2508_p7 = pnand %p2511_p4, %p2748_p6 }
 0x4e4   : > { %p2509_p8 = pneg %p2508_p7 }
 0x4e6   : > { %2617 = dma.done.wait (%p2509_p8), %s2127_s16, 16  }
 0x4e7   : > { %2619 = vsyncadd (%p2509_p8), %s2127_s16, 4294967280  ;;  %s4151_s28 = sld [smem:[#allocation9_spill]]  ;;  %s4154_s25 = smov %s2626_s26 }
 0x4e8   : > { %s4152_s22 = sld [smem:[#allocation8_spill]] }
 0x4e9   : > { %s4153_s27 = sld [smem:[#allocation10_spill]] }
 0x4ed   : > { %p23_p9 = scmp.ge.s32.totalorder %s4151_s28, 4  }
 0x4ee   : > { %s4155_s26 = smov %s4152_s22 }
 0x4ef   :  { %25 = sbr.rel (!%p23_p9) target bundleno = 3 (0x3), region = 129 }
 0x4f4   :  { %2132 = vsyncpa [#allocation6], 1 }
 0x4f5   :  { %2134 = vsyncpa [#allocation6 + $0x1], 1 }

</bundles_post_ra>
